<compile_context>
chip_gen: v7x
topology: tpu7x:2x2x1
jax: 0.10.0
libtpu: 0.0.40
codegen_flags: <defaults>
</compile_context>

<pallas_src>
import numpy as np
import jax
import jax.numpy as jnp
from jax.experimental import pallas as pl
from jax.experimental.pallas import tpu as pltpu

# ----------------------------- sizes (scaled-down BERT) ---------------------
B, S, H = 2, 16, 128        # batch, seq_len, hidden (768 -> 128)
BS = B * S
FFN = 256                   # intermediate size (3072 -> 256)
FC_OUT = 128                # fc output (512 -> 128)
NCLS = 2                    # classifier output
GFEAT = 10                  # graph feature width (same as module)
VOCAB = 100
VOCAB_PAD = 128             # embedding table padded to a lane-friendly size
SLAB_ROWS = 24              # packed small-param slab rows (f32, width 256)

F32 = jnp.float32
BF16 = jnp.bfloat16


# ----------------------------- in-kernel helpers ----------------------------
def _mxu(a, w):
    """bf16-input MXU matmul, f32 accumulation."""
    return jnp.dot(a.astype(BF16), w.astype(BF16), preferred_element_type=F32)


def _mxu_t(a, b):
    """Contract last dims: (M,K) x (N,K) -> (M,N), bf16 in, f32 out."""
    return jax.lax.dot_general(a.astype(BF16), b.astype(BF16),
                               (((1,), (1,)), ((), ())),
                               preferred_element_type=F32)


def _layernorm(x, g, b, eps=1e-12):
    mu = jnp.mean(x, axis=-1, keepdims=True)
    var = jnp.mean((x - mu) ** 2, axis=-1, keepdims=True)
    return (x - mu) * jax.lax.rsqrt(var + eps) * g + b


def _gelu(x):
    # tanh-approximate GELU (EUP-friendly)
    return 0.5 * x * (1.0 + jnp.tanh(0.7978845608028654 * (x + 0.044715 * x * x * x)))


def _sigmoid(x):
    # 1/(1+exp(-x)) with the divide on the EUP
    return pl.reciprocal(1.0 + jnp.exp(-x), approx=True)


# ----------------------------- the fused kernel -----------------------------
def fused_kernel(ids_ref, bias_ref, gf_ref, pos_ref,
                 emb_ref, wqkv_ref, wo_ref, w1_ref, w2_ref,
                 headw_ref, sel_ref, slab_ref,
                 logits_ref, re_ref):
    # ---- packed small-param slab: static slices (free ref views) ------------
    bq    = slab_ref[0:1, 0:H]
    bk    = slab_ref[1:2, 0:H]
    bv    = slab_ref[2:3, 0:H]
    bo    = slab_ref[3:4, 0:H]
    ln1g  = slab_ref[4:5, 0:H]
    ln1b  = slab_ref[5:6, 0:H]
    b1    = slab_ref[6:7, 0:FFN]
    b2    = slab_ref[7:8, 0:H]
    ln2g  = slab_ref[8:9, 0:H]
    ln2b  = slab_ref[9:10, 0:H]
    fcb   = slab_ref[10:11, 0:FC_OUT]
    clsb  = slab_ref[11:12, 0:FC_OUT]
    reb   = slab_ref[12:13, 0:1]            # scalar bias, broadcast at the add
    rew   = slab_ref[13:15, 0:H]            # (2,H): [re_w1 ; re_w2]
    clssel = slab_ref[16:16 + B, 0:BS]      # (B,BS) one-hot CLS row selector

    # ---- embedding lookup as a one-hot bf16 MXU matmul + pre-tiled pos add --
    ids = ids_ref[...]                                            # (BS,1) int32
    vocab_iota = jax.lax.broadcasted_iota(jnp.int32, (BS, VOCAB_PAD), 1)
    onehot = jnp.where(vocab_iota == ids, 1.0, 0.0).astype(BF16)  # (BS,VOCAB_PAD)
    x = jnp.dot(onehot, emb_ref[...], preferred_element_type=F32) + pos_ref[...]

    # ---- fused QKV; block-diagonal attention via precomputed additive bias --
    qkv = _mxu(x, wqkv_ref[...])                                  # (BS,3H)
    q = qkv[:, 0:H] + bq
    k = qkv[:, H:2 * H] + bk
    v = qkv[:, 2 * H:3 * H] + bv

    scores = _mxu_t(q, k) * (H ** -0.5) + bias_ref[...]           # one fused add
    scores = scores - jnp.max(scores, axis=-1, keepdims=True)
    p = jnp.exp(scores)
    attn = p * pl.reciprocal(jnp.sum(p, axis=-1, keepdims=True), approx=True)

    ctx = _mxu(attn, v)                                           # (BS,H)
    attn_out = _mxu(ctx, wo_ref[...]) + bo
    h1 = _layernorm(x + attn_out, ln1g, ln1b)

    ff = _mxu(_gelu(_mxu(h1, w1_ref[...]) + b1), w2_ref[...]) + b2
    bert_out = _layernorm(h1 + ff, ln2g, ln2b)                    # (BS,H) f32

    # ---- classification head: CLS rows via one-hot matmul, packed head weights
    cls_rows = jnp.dot(clssel.astype(BF16), bert_out.astype(BF16),
                       preferred_element_type=F32)                # (B,H)
    combined = jnp.concatenate([cls_rows, gf_ref[...]], axis=-1)  # (B,2H), 128-aligned
    hfc = jnp.maximum(_mxu(combined, headw_ref[:, 0:FC_OUT]) + fcb, 0.0)
    logits_ref[...] = _mxu(hfc, headw_ref[0:FC_OUT, FC_OUT:2 * FC_OUT]) + clsb

    # ---- all-pairs relation scores in 3 small bf16 matmuls ------------------
    # score[b,j,k] = sigmoid(w1.e_{b,j} + w2.e_{b,k} + b) emitted flat at
    # n = b*S*S + j*S + k against a precomputed 0/1 selection matrix.
    acT = _mxu_t(rew, bert_out)                                   # (2,BS)
    re_pre = (_mxu(acT[0:1, :], sel_ref[0:BS, :])
              + _mxu(acT[1:2, :], sel_ref[BS:2 * BS, :])
              + reb)                                              # (1,B*S*S)
    re_ref[...] = _sigmoid(re_pre)


# ----------------------------- wrapper ---------------------------------------
def _vmem():
    return pl.BlockSpec(memory_space=pltpu.MemorySpace.VMEM)


def _fused_forward_impl(input_ids, attention_mask, graph_features, p):
    ids_col = input_ids.reshape(BS, 1).astype(jnp.int32)

    # additive attention bias: 0 where (same batch AND key unmasked), else -1e9
    mask_flat = attention_mask.reshape(1, BS).astype(F32)
    same_batch = (jnp.arange(BS)[:, None] // S) == (jnp.arange(BS)[None, :] // S)
    allowed = jnp.where(same_batch, mask_flat, 0.0)
    attn_bias = (allowed - 1.0) * 1e9                             # (BS,BS) f32

    gf_pad = jnp.zeros((B, H), F32).at[:, :GFEAT].set(graph_features.astype(F32))

    logits_pad, re_row = pl.pallas_call(
        fused_kernel,
        out_shape=(jax.ShapeDtypeStruct((B, FC_OUT), F32),        # padded logits
                   jax.ShapeDtypeStruct((1, B * S * S), F32)),    # flat pair scores
        in_specs=[_vmem()] * 12,
        out_specs=(_vmem(), _vmem()),
    )(ids_col, attn_bias, gf_pad, p["pos"],
      p["emb"], p["wqkv"], p["wo"], p["w1"], p["w2"],
      p["headw"], p["selAC"], p["slab"])
    return logits_pad[:, :NCLS], re_row.reshape(B, S * S)


fused_forward = jax.jit(_fused_forward_impl)


# ----------------------------- model (host glue + kernel) -------------------
def legal_extraction_forward(input_ids, attention_mask, graph_features,
                             node_counts, params, mode="classify"):
    logits, re_flat = fused_forward(input_ids, attention_mask, graph_features, params)

    if mode == "re":
        # TODO(synk): ragged per-graph pair extraction / empty-graph skipping is
        # host Python (matches the PyTorch loop over networkx graph objects).
        pieces = []
        for i, nnode in enumerate(node_counts):
            nnode = min(int(nnode), 30, S)
            if nnode < 2:
                continue
            jj, kk = np.triu_indices(nnode, k=1)
            pieces.append(re_flat[i, jj * S + kk])
        if not pieces:
            return jnp.zeros((0,), F32)
        return jnp.concatenate(pieces)

    return logits


# ----------------------------- deterministic params -------------------------
def init_params(key):
    ks = jax.random.split(key, 16)
    std = 0.02
    n = lambda k, shape: jax.random.normal(k, shape, F32) * std

    emb = jnp.zeros((VOCAB_PAD, H), F32).at[:VOCAB].set(n(ks[0], (VOCAB, H)))
    pos = jnp.tile(n(ks[1], (S, H)), (B, 1))                     # pre-tiled (BS,H)

    wqkv = jnp.concatenate([n(ks[2], (H, H)), n(ks[3], (H, H)), n(ks[4], (H, H))],
                           axis=1)                                # (H,3H)
    wo = n(ks[5], (H, H))
    w1 = n(ks[6], (H, FFN))
    w2 = n(ks[7], (FFN, H))

    # fc = Linear(H+GFEAT, FC_OUT): rows [0:H] cls, [H:H+GFEAT] graph, rest zero.
    fc_w = (jnp.zeros((2 * H, FC_OUT), F32)
            .at[:H].set(n(ks[8], (H, FC_OUT)))
            .at[H:H + GFEAT].set(n(ks[9], (GFEAT, FC_OUT))))
    # classifier = Linear(FC_OUT, NCLS) padded to 128 output lanes.
    cls_w = jnp.zeros((FC_OUT, FC_OUT), F32).at[:, :NCLS].set(n(ks[10], (FC_OUT, NCLS)))
    # packed head weights: cols [0:128]=fc_w, rows[0:128] cols[128:256]=cls_w.
    headw = (jnp.zeros((2 * H, 2 * FC_OUT), F32)
             .at[:, :FC_OUT].set(fc_w)
             .at[:FC_OUT, FC_OUT:].set(cls_w))

    # packed small-param slab (f32, SLAB_ROWS x 256)
    slab = jnp.zeros((SLAB_ROWS, 256), F32)
    slab = slab.at[0, :H].set(n(ks[13], (H,)))          # bq
    slab = slab.at[1, :H].set(n(ks[14], (H,)))          # bk
    slab = slab.at[2, :H].set(n(ks[15], (H,)))          # bv
    # row 3 bo = 0, rows 6/7 b1/b2 = 0, row 10 fc_b = 0 (zeros already)
    slab = slab.at[4, :H].set(1.0)                      # ln1_g
    slab = slab.at[8, :H].set(1.0)                      # ln2_g
    slab = slab.at[11, :NCLS].set(n(ks[12], (NCLS,)))   # cls_b (valid lanes only)
    slab = slab.at[12, 0].set(0.01)                     # re_b scalar
    slab = slab.at[13, :H].set(n(ks[11], (H,)))         # re_w1
    slab = slab.at[14, :H].set(n(ks[9], (H,)))          # re_w2
    cls_sel = np.zeros((B, BS), np.float32)
    for b in range(B):
        cls_sel[b, b * S] = 1.0                          # CLS one-hot selector
    slab = slab.at[16:16 + B, :BS].set(jnp.asarray(cls_sel))

    # RE pair-selection matrix (constant): out[n=b*S*S+j*S+k] picks a[b*S+j], c[b*S+k]
    t = np.arange(BS)
    nn_ = np.arange(B * S * S)
    sel_a = ((nn_[None, :] // (S * S)) == (t[:, None] // S)) & \
            (((nn_[None, :] % (S * S)) // S) == (t[:, None] % S))
    sel_c = ((nn_[None, :] // (S * S)) == (t[:, None] // S)) & \
            ((nn_[None, :] % S) == (t[:, None] % S))
    selAC = jnp.asarray(np.concatenate([sel_a, sel_c], axis=0).astype(np.float32))

    return {
        "emb": emb.astype(BF16), "pos": pos,
        "wqkv": wqkv.astype(BF16), "wo": wo.astype(BF16),
        "w1": w1.astype(BF16), "w2": w2.astype(BF16),
        "headw": headw.astype(BF16),
        "selAC": selAC.astype(BF16),
        "slab": slab,
    }


# ----------------------------- demo ------------------------------------------
if __name__ == "__main__":
    key = jax.random.PRNGKey(0)
    params = init_params(key)

    kid, _ = jax.random.split(key)
    input_ids = jax.random.randint(kid, (B, S), 0, VOCAB, dtype=jnp.int32)
    attention_mask = jnp.ones((B, S), F32).at[1, S - 4:].set(0.0)

    # synthetic "networkx graphs": adjacency matrices -> avg-degree features (host glue)
    rng = np.random.RandomState(0)
    node_counts = [6, 3]
    gfeat = []
    for nnodes in node_counts:
        adj = (rng.rand(nnodes, nnodes) < 0.5).astype(np.float32)
        adj = np.triu(adj, 1)
        adj = adj + adj.T
        degs = adj.sum(axis=1)
        avg = float(degs.mean()) if nnodes > 0 else 0.0
        gfeat.append([avg] * GFEAT)
    graph_features = jnp.asarray(gfeat, dtype=F32)                # (B, 10)

    logits = legal_extraction_forward(input_ids, attention_mask, graph_features,
                                      node_counts, params, mode="classify")
    re_scores = legal_extraction_forward(input_ids, attention_mask, graph_features,
                                         node_counts, params, mode="re")

    jax.block_until_ready(logits)
    jax.block_until_ready(re_scores)

    assert logits.shape == (B, NCLS)
    expected_pairs = sum(n * (n - 1) // 2 for n in node_counts if n >= 2)
    assert re_scores.shape == (expected_pairs,)
    assert bool(jnp.all(jnp.isfinite(logits)))
    assert bool(jnp.all(jnp.isfinite(re_scores)))
    assert bool(jnp.all((re_scores >= -1e-3) & (re_scores <= 1.0 + 1e-3)))
    print("KERNEL_OK")
</pallas_src>

<mosaic_0001>
module attributes {stable_mosaic.version = 11 : i64} {
  func.func @fused_kernel(%arg0: memref<32x1xi32, #tpu.memory_space<vmem>>, %arg1: memref<32x32xf32, #tpu.memory_space<vmem>>, %arg2: memref<2x128xf32, #tpu.memory_space<vmem>>, %arg3: memref<32x128xf32, #tpu.memory_space<vmem>>, %arg4: memref<128x128xbf16, #tpu.memory_space<vmem>>, %arg5: memref<128x384xbf16, #tpu.memory_space<vmem>>, %arg6: memref<128x128xbf16, #tpu.memory_space<vmem>>, %arg7: memref<128x256xbf16, #tpu.memory_space<vmem>>, %arg8: memref<256x128xbf16, #tpu.memory_space<vmem>>, %arg9: memref<256x256xbf16, #tpu.memory_space<vmem>>, %arg10: memref<64x512xbf16, #tpu.memory_space<vmem>>, %arg11: memref<24x256xf32, #tpu.memory_space<vmem>>, %arg12: memref<2x128xf32, #tpu.memory_space<vmem>>, %arg13: memref<1x512xf32, #tpu.memory_space<vmem>>) attributes {dimension_semantics = [], scalar_prefetch = 0 : i64, scratch_operands = 0 : i64, tpu.core_type = #tpu.core_type<tc>} {
    %c0 = arith.constant 0 : index
    %c0_0 = arith.constant 0 : index
    %0 = vector.load %arg11[%c0, %c0_0] : memref<24x256xf32, #tpu.memory_space<vmem>>, vector<1x128xf32>
    %c1 = arith.constant 1 : index
    %c0_1 = arith.constant 0 : index
    %1 = vector.load %arg11[%c1, %c0_1] : memref<24x256xf32, #tpu.memory_space<vmem>>, vector<1x128xf32>
    %c2 = arith.constant 2 : index
    %c0_2 = arith.constant 0 : index
    %2 = vector.load %arg11[%c2, %c0_2] : memref<24x256xf32, #tpu.memory_space<vmem>>, vector<1x128xf32>
    %c3 = arith.constant 3 : index
    %c0_3 = arith.constant 0 : index
    %3 = vector.load %arg11[%c3, %c0_3] : memref<24x256xf32, #tpu.memory_space<vmem>>, vector<1x128xf32>
    %c4 = arith.constant 4 : index
    %c0_4 = arith.constant 0 : index
    %4 = vector.load %arg11[%c4, %c0_4] : memref<24x256xf32, #tpu.memory_space<vmem>>, vector<1x128xf32>
    %c5 = arith.constant 5 : index
    %c0_5 = arith.constant 0 : index
    %5 = vector.load %arg11[%c5, %c0_5] : memref<24x256xf32, #tpu.memory_space<vmem>>, vector<1x128xf32>
    %c6 = arith.constant 6 : index
    %c0_6 = arith.constant 0 : index
    %6 = vector.load %arg11[%c6, %c0_6] : memref<24x256xf32, #tpu.memory_space<vmem>>, vector<1x256xf32>
    %c7 = arith.constant 7 : index
    %c0_7 = arith.constant 0 : index
    %7 = vector.load %arg11[%c7, %c0_7] : memref<24x256xf32, #tpu.memory_space<vmem>>, vector<1x128xf32>
    %c8 = arith.constant 8 : index
    %c0_8 = arith.constant 0 : index
    %8 = vector.load %arg11[%c8, %c0_8] : memref<24x256xf32, #tpu.memory_space<vmem>>, vector<1x128xf32>
    %c9 = arith.constant 9 : index
    %c0_9 = arith.constant 0 : index
    %9 = vector.load %arg11[%c9, %c0_9] : memref<24x256xf32, #tpu.memory_space<vmem>>, vector<1x128xf32>
    %c10 = arith.constant 10 : index
    %c0_10 = arith.constant 0 : index
    %10 = vector.load %arg11[%c10, %c0_10] : memref<24x256xf32, #tpu.memory_space<vmem>>, vector<1x128xf32>
    %c11 = arith.constant 11 : index
    %c0_11 = arith.constant 0 : index
    %11 = vector.load %arg11[%c11, %c0_11] : memref<24x256xf32, #tpu.memory_space<vmem>>, vector<1x128xf32>
    %c12 = arith.constant 12 : index
    %c0_12 = arith.constant 0 : index
    %12 = vector.load %arg11[%c12, %c0_12] : memref<24x256xf32, #tpu.memory_space<vmem>>, vector<1x1xf32>
    %c13 = arith.constant 13 : index
    %c0_13 = arith.constant 0 : index
    %13 = vector.load %arg11[%c13, %c0_13] : memref<24x256xf32, #tpu.memory_space<vmem>>, vector<2x128xf32>
    %c16 = arith.constant 16 : index
    %c0_14 = arith.constant 0 : index
    %14 = vector.load %arg11[%c16, %c0_14] : memref<24x256xf32, #tpu.memory_space<vmem>>, vector<2x32xf32>
    %c0_15 = arith.constant 0 : index
    %c0_16 = arith.constant 0 : index
    %15 = vector.load %arg0[%c0_15, %c0_16] : memref<32x1xi32, #tpu.memory_space<vmem>>, vector<32x1xi32>
    %16 = tpu.iota {dimensions = array<i32: 1>} : vector<32x128xi32>
    %17 = vector.broadcast %15 : vector<32x1xi32> to vector<32x128xi32>
    %18 = arith.cmpi eq, %16, %17 : vector<32x128xi32>
    %cst = arith.constant 1.000000e+00 : f32
    %cst_17 = arith.constant 0.000000e+00 : f32
    %19 = vector.broadcast %cst : f32 to vector<32x128xf32>
    %20 = vector.broadcast %cst_17 : f32 to vector<32x128xf32>
    %21 = arith.select %18, %19, %20 : vector<32x128xi1>, vector<32x128xf32>
    %22 = arith.truncf %21 : vector<32x128xf32> to vector<32x128xbf16>
    %c0_18 = arith.constant 0 : index
    %c0_19 = arith.constant 0 : index
    %23 = vector.load %arg4[%c0_18, %c0_19] : memref<128x128xbf16, #tpu.memory_space<vmem>>, vector<128x128xbf16>
    %cst_20 = arith.constant dense<0.000000e+00> : vector<32x128xf32>
    %24 = tpu.matmul %22, %23, %cst_20 {dimension_numbers = #tpu.dot_dimension_numbers<[1], [0], [0], [1], [0, 0, 1, 1], [], []>} : vector<32x128xbf16>, vector<128x128xbf16>, vector<32x128xf32> -> vector<32x128xf32>
    %c0_21 = arith.constant 0 : index
    %c0_22 = arith.constant 0 : index
    %25 = vector.load %arg3[%c0_21, %c0_22] : memref<32x128xf32, #tpu.memory_space<vmem>>, vector<32x128xf32>
    %26 = arith.addf %24, %25 : vector<32x128xf32>
    %c0_23 = arith.constant 0 : index
    %c0_24 = arith.constant 0 : index
    %27 = vector.load %arg5[%c0_23, %c0_24] : memref<128x384xbf16, #tpu.memory_space<vmem>>, vector<128x384xbf16>
    %28 = arith.truncf %26 : vector<32x128xf32> to vector<32x128xbf16>
    %cst_25 = arith.constant dense<0.000000e+00> : vector<32x384xf32>
    %29 = tpu.matmul %28, %27, %cst_25 {dimension_numbers = #tpu.dot_dimension_numbers<[1], [0], [0], [1], [0, 0, 1, 1], [], []>} : vector<32x128xbf16>, vector<128x384xbf16>, vector<32x384xf32> -> vector<32x384xf32>
    %30 = vector.extract_strided_slice %29 {offsets = [0, 0], sizes = [32, 128], strides = [1, 1]} : vector<32x384xf32> to vector<32x128xf32>
    %31 = vector.broadcast %0 : vector<1x128xf32> to vector<32x128xf32>
    %32 = arith.addf %30, %31 : vector<32x128xf32>
    %33 = vector.extract_strided_slice %29 {offsets = [0, 128], sizes = [32, 128], strides = [1, 1]} : vector<32x384xf32> to vector<32x128xf32>
    %34 = vector.broadcast %1 : vector<1x128xf32> to vector<32x128xf32>
    %35 = arith.addf %33, %34 : vector<32x128xf32>
    %36 = vector.extract_strided_slice %29 {offsets = [0, 256], sizes = [32, 128], strides = [1, 1]} : vector<32x384xf32> to vector<32x128xf32>
    %37 = vector.broadcast %2 : vector<1x128xf32> to vector<32x128xf32>
    %38 = arith.addf %36, %37 : vector<32x128xf32>
    %39 = arith.truncf %32 : vector<32x128xf32> to vector<32x128xbf16>
    %40 = arith.truncf %35 : vector<32x128xf32> to vector<32x128xbf16>
    %cst_26 = arith.constant dense<0.000000e+00> : vector<32x32xf32>
    %41 = tpu.matmul %39, %40, %cst_26 {dimension_numbers = #tpu.dot_dimension_numbers<[1], [1], [0], [0], [0, 0, 1, 0], [], []>} : vector<32x128xbf16>, vector<32x128xbf16>, vector<32x32xf32> -> vector<32x32xf32>
    %cst_27 = arith.constant 0.0883883461 : f32
    %42 = vector.broadcast %cst_27 : f32 to vector<32x32xf32>
    %43 = arith.mulf %41, %42 : vector<32x32xf32>
    %c0_28 = arith.constant 0 : index
    %c0_29 = arith.constant 0 : index
    %44 = vector.load %arg1[%c0_28, %c0_29] : memref<32x32xf32, #tpu.memory_space<vmem>>, vector<32x32xf32>
    %45 = arith.addf %43, %44 : vector<32x32xf32>
    %cst_30 = arith.constant dense<0xFF800000> : vector<32xf32>
    %46 = vector.multi_reduction <maximumf>, %45, %cst_30 [1] : vector<32x32xf32> to vector<32xf32>
    %47 = vector.shape_cast %46 : vector<32xf32> to vector<32x1xf32>
    %48 = vector.broadcast %47 : vector<32x1xf32> to vector<32x32xf32>
    %49 = arith.subf %45, %48 : vector<32x32xf32>
    %50 = math.exp %49 : vector<32x32xf32>
    %cst_31 = arith.constant dense<0.000000e+00> : vector<32xf32>
    %51 = vector.multi_reduction <add>, %50, %cst_31 [1] : vector<32x32xf32> to vector<32xf32>
    %52 = vector.shape_cast %51 : vector<32xf32> to vector<32x1xf32>
    %53 = tpu.reciprocal %52 {approx = true} : vector<32x1xf32> -> vector<32x1xf32>
    %54 = vector.broadcast %53 : vector<32x1xf32> to vector<32x32xf32>
    %55 = arith.mulf %50, %54 : vector<32x32xf32>
    %56 = arith.truncf %55 : vector<32x32xf32> to vector<32x32xbf16>
    %57 = arith.truncf %38 : vector<32x128xf32> to vector<32x128xbf16>
    %cst_32 = arith.constant dense<0.000000e+00> : vector<32x128xf32>
    %58 = tpu.matmul %56, %57, %cst_32 {dimension_numbers = #tpu.dot_dimension_numbers<[1], [0], [0], [1], [0, 0, 1, 1], [], []>} : vector<32x32xbf16>, vector<32x128xbf16>, vector<32x128xf32> -> vector<32x128xf32>
    %c0_33 = arith.constant 0 : index
    %c0_34 = arith.constant 0 : index
    %59 = vector.load %arg6[%c0_33, %c0_34] : memref<128x128xbf16, #tpu.memory_space<vmem>>, vector<128x128xbf16>
    %60 = arith.truncf %58 : vector<32x128xf32> to vector<32x128xbf16>
    %cst_35 = arith.constant dense<0.000000e+00> : vector<32x128xf32>
    %61 = tpu.matmul %60, %59, %cst_35 {dimension_numbers = #tpu.dot_dimension_numbers<[1], [0], [0], [1], [0, 0, 1, 1], [], []>} : vector<32x128xbf16>, vector<128x128xbf16>, vector<32x128xf32> -> vector<32x128xf32>
    %62 = vector.broadcast %3 : vector<1x128xf32> to vector<32x128xf32>
    %63 = arith.addf %61, %62 : vector<32x128xf32>
    %64 = arith.addf %26, %63 : vector<32x128xf32>
    %cst_36 = arith.constant dense<0.000000e+00> : vector<32xf32>
    %65 = vector.multi_reduction <add>, %64, %cst_36 [1] : vector<32x128xf32> to vector<32xf32>
    %66 = vector.shape_cast %65 : vector<32xf32> to vector<32x1xf32>
    %cst_37 = arith.constant 1.280000e+02 : f32
    %67 = vector.broadcast %cst_37 : f32 to vector<32x1xf32>
    %68 = arith.divf %66, %67 : vector<32x1xf32>
    %69 = vector.broadcast %68 : vector<32x1xf32> to vector<32x128xf32>
    %70 = arith.subf %64, %69 : vector<32x128xf32>
    %71 = arith.mulf %70, %70 : vector<32x128xf32>
    %cst_38 = arith.constant dense<0.000000e+00> : vector<32xf32>
    %72 = vector.multi_reduction <add>, %71, %cst_38 [1] : vector<32x128xf32> to vector<32xf32>
    %73 = vector.shape_cast %72 : vector<32xf32> to vector<32x1xf32>
    %cst_39 = arith.constant 1.280000e+02 : f32
    %74 = vector.broadcast %cst_39 : f32 to vector<32x1xf32>
    %75 = arith.divf %73, %74 : vector<32x1xf32>
    %76 = vector.broadcast %68 : vector<32x1xf32> to vector<32x128xf32>
    %77 = arith.subf %64, %76 : vector<32x128xf32>
    %cst_40 = arith.constant 9.99999996E-13 : f32
    %78 = vector.broadcast %cst_40 : f32 to vector<32x1xf32>
    %79 = arith.addf %75, %78 : vector<32x1xf32>
    %80 = math.rsqrt %79 : vector<32x1xf32>
    %81 = vector.broadcast %80 : vector<32x1xf32> to vector<32x128xf32>
    %82 = arith.mulf %77, %81 : vector<32x128xf32>
    %83 = vector.broadcast %4 : vector<1x128xf32> to vector<32x128xf32>
    %84 = arith.mulf %82, %83 : vector<32x128xf32>
    %85 = vector.broadcast %5 : vector<1x128xf32> to vector<32x128xf32>
    %86 = arith.addf %84, %85 : vector<32x128xf32>
    %c0_41 = arith.constant 0 : index
    %c0_42 = arith.constant 0 : index
    %87 = vector.load %arg7[%c0_41, %c0_42] : memref<128x256xbf16, #tpu.memory_space<vmem>>, vector<128x256xbf16>
    %88 = arith.truncf %86 : vector<32x128xf32> to vector<32x128xbf16>
    %cst_43 = arith.constant dense<0.000000e+00> : vector<32x256xf32>
    %89 = tpu.matmul %88, %87, %cst_43 {dimension_numbers = #tpu.dot_dimension_numbers<[1], [0], [0], [1], [0, 0, 1, 1], [], []>} : vector<32x128xbf16>, vector<128x256xbf16>, vector<32x256xf32> -> vector<32x256xf32>
    %90 = vector.broadcast %6 : vector<1x256xf32> to vector<32x256xf32>
    %91 = arith.addf %89, %90 : vector<32x256xf32>
    %cst_44 = arith.constant 5.000000e-01 : f32
    %92 = vector.broadcast %cst_44 : f32 to vector<32x256xf32>
    %93 = arith.mulf %92, %91 : vector<32x256xf32>
    %cst_45 = arith.constant 4.471500e-02 : f32
    %94 = vector.broadcast %cst_45 : f32 to vector<32x256xf32>
    %95 = arith.mulf %94, %91 : vector<32x256xf32>
    %96 = arith.mulf %95, %91 : vector<32x256xf32>
    %97 = arith.mulf %96, %91 : vector<32x256xf32>
    %98 = arith.addf %91, %97 : vector<32x256xf32>
    %cst_46 = arith.constant 0.797884583 : f32
    %99 = vector.broadcast %cst_46 : f32 to vector<32x256xf32>
    %100 = arith.mulf %99, %98 : vector<32x256xf32>
    %101 = math.tanh %100 : vector<32x256xf32>
    %cst_47 = arith.constant 1.000000e+00 : f32
    %102 = vector.broadcast %cst_47 : f32 to vector<32x256xf32>
    %103 = arith.addf %102, %101 : vector<32x256xf32>
    %104 = arith.mulf %93, %103 : vector<32x256xf32>
    %c0_48 = arith.constant 0 : index
    %c0_49 = arith.constant 0 : index
    %105 = vector.load %arg8[%c0_48, %c0_49] : memref<256x128xbf16, #tpu.memory_space<vmem>>, vector<256x128xbf16>
    %106 = arith.truncf %104 : vector<32x256xf32> to vector<32x256xbf16>
    %cst_50 = arith.constant dense<0.000000e+00> : vector<32x128xf32>
    %107 = tpu.matmul %106, %105, %cst_50 {dimension_numbers = #tpu.dot_dimension_numbers<[1], [0], [0], [1], [0, 0, 1, 1], [], []>} : vector<32x256xbf16>, vector<256x128xbf16>, vector<32x128xf32> -> vector<32x128xf32>
    %108 = vector.broadcast %7 : vector<1x128xf32> to vector<32x128xf32>
    %109 = arith.addf %107, %108 : vector<32x128xf32>
    %110 = arith.addf %86, %109 : vector<32x128xf32>
    %cst_51 = arith.constant dense<0.000000e+00> : vector<32xf32>
    %111 = vector.multi_reduction <add>, %110, %cst_51 [1] : vector<32x128xf32> to vector<32xf32>
    %112 = vector.shape_cast %111 : vector<32xf32> to vector<32x1xf32>
    %cst_52 = arith.constant 1.280000e+02 : f32
    %113 = vector.broadcast %cst_52 : f32 to vector<32x1xf32>
    %114 = arith.divf %112, %113 : vector<32x1xf32>
    %115 = vector.broadcast %114 : vector<32x1xf32> to vector<32x128xf32>
    %116 = arith.subf %110, %115 : vector<32x128xf32>
    %117 = arith.mulf %116, %116 : vector<32x128xf32>
    %cst_53 = arith.constant dense<0.000000e+00> : vector<32xf32>
    %118 = vector.multi_reduction <add>, %117, %cst_53 [1] : vector<32x128xf32> to vector<32xf32>
    %119 = vector.shape_cast %118 : vector<32xf32> to vector<32x1xf32>
    %cst_54 = arith.constant 1.280000e+02 : f32
    %120 = vector.broadcast %cst_54 : f32 to vector<32x1xf32>
    %121 = arith.divf %119, %120 : vector<32x1xf32>
    %122 = vector.broadcast %114 : vector<32x1xf32> to vector<32x128xf32>
    %123 = arith.subf %110, %122 : vector<32x128xf32>
    %cst_55 = arith.constant 9.99999996E-13 : f32
    %124 = vector.broadcast %cst_55 : f32 to vector<32x1xf32>
    %125 = arith.addf %121, %124 : vector<32x1xf32>
    %126 = math.rsqrt %125 : vector<32x1xf32>
    %127 = vector.broadcast %126 : vector<32x1xf32> to vector<32x128xf32>
    %128 = arith.mulf %123, %127 : vector<32x128xf32>
    %129 = vector.broadcast %8 : vector<1x128xf32> to vector<32x128xf32>
    %130 = arith.mulf %128, %129 : vector<32x128xf32>
    %131 = vector.broadcast %9 : vector<1x128xf32> to vector<32x128xf32>
    %132 = arith.addf %130, %131 : vector<32x128xf32>
    %133 = arith.truncf %14 : vector<2x32xf32> to vector<2x32xbf16>
    %134 = arith.truncf %132 : vector<32x128xf32> to vector<32x128xbf16>
    %cst_56 = arith.constant dense<0.000000e+00> : vector<2x128xf32>
    %135 = tpu.matmul %133, %134, %cst_56 {dimension_numbers = #tpu.dot_dimension_numbers<[1], [0], [0], [1], [0, 0, 1, 1], [], []>} : vector<2x32xbf16>, vector<32x128xbf16>, vector<2x128xf32> -> vector<2x128xf32>
    %c0_57 = arith.constant 0 : index
    %c0_58 = arith.constant 0 : index
    %136 = vector.load %arg2[%c0_57, %c0_58] : memref<2x128xf32, #tpu.memory_space<vmem>>, vector<2x128xf32>
    %137 = tpu.concatenate %135, %136 in 1 : vector<2x128xf32>, vector<2x128xf32> -> vector<2x256xf32>
    %c0_59 = arith.constant 0 : index
    %c0_60 = arith.constant 0 : index
    %138 = vector.load %arg9[%c0_59, %c0_60] : memref<256x256xbf16, #tpu.memory_space<vmem>>, vector<256x128xbf16>
    %139 = arith.truncf %137 : vector<2x256xf32> to vector<2x256xbf16>
    %cst_61 = arith.constant dense<0.000000e+00> : vector<2x128xf32>
    %140 = tpu.matmul %139, %138, %cst_61 {dimension_numbers = #tpu.dot_dimension_numbers<[1], [0], [0], [1], [0, 0, 1, 1], [], []>} : vector<2x256xbf16>, vector<256x128xbf16>, vector<2x128xf32> -> vector<2x128xf32>
    %141 = vector.broadcast %10 : vector<1x128xf32> to vector<2x128xf32>
    %142 = arith.addf %140, %141 : vector<2x128xf32>
    %cst_62 = arith.constant 0.000000e+00 : f32
    %143 = vector.broadcast %cst_62 : f32 to vector<2x128xf32>
    %144 = arith.maximumf %142, %143 : vector<2x128xf32>
    %c0_63 = arith.constant 0 : index
    %c128 = arith.constant 128 : index
    %145 = vector.load %arg9[%c0_63, %c128] : memref<256x256xbf16, #tpu.memory_space<vmem>>, vector<128x128xbf16>
    %146 = arith.truncf %144 : vector<2x128xf32> to vector<2x128xbf16>
    %cst_64 = arith.constant dense<0.000000e+00> : vector<2x128xf32>
    %147 = tpu.matmul %146, %145, %cst_64 {dimension_numbers = #tpu.dot_dimension_numbers<[1], [0], [0], [1], [0, 0, 1, 1], [], []>} : vector<2x128xbf16>, vector<128x128xbf16>, vector<2x128xf32> -> vector<2x128xf32>
    %148 = vector.broadcast %11 : vector<1x128xf32> to vector<2x128xf32>
    %149 = arith.addf %147, %148 : vector<2x128xf32>
    %c0_65 = arith.constant 0 : index
    %c0_66 = arith.constant 0 : index
    %150 = vector.load %arg12[%c0_65, %c0_66] : memref<2x128xf32, #tpu.memory_space<vmem>>, vector<2x128xf32>
    tpu.vector_store %arg12[%c0_65, %c0_66], %149 {strides = array<i32>} : memref<2x128xf32, #tpu.memory_space<vmem>>, vector<2x128xf32>,
    %151 = arith.truncf %13 : vector<2x128xf32> to vector<2x128xbf16>
    %152 = arith.truncf %132 : vector<32x128xf32> to vector<32x128xbf16>
    %cst_67 = arith.constant dense<0.000000e+00> : vector<2x32xf32>
    %153 = tpu.matmul %151, %152, %cst_67 {dimension_numbers = #tpu.dot_dimension_numbers<[1], [1], [0], [0], [0, 0, 1, 0], [], []>} : vector<2x128xbf16>, vector<32x128xbf16>, vector<2x32xf32> -> vector<2x32xf32>
    %154 = vector.extract_strided_slice %153 {offsets = [0, 0], sizes = [1, 32], strides = [1, 1]} : vector<2x32xf32> to vector<1x32xf32>
    %c0_68 = arith.constant 0 : index
    %c0_69 = arith.constant 0 : index
    %155 = vector.load %arg10[%c0_68, %c0_69] : memref<64x512xbf16, #tpu.memory_space<vmem>>, vector<32x512xbf16>
    %156 = arith.truncf %154 : vector<1x32xf32> to vector<1x32xbf16>
    %cst_70 = arith.constant dense<0.000000e+00> : vector<1x512xf32>
    %157 = tpu.matmul %156, %155, %cst_70 {dimension_numbers = #tpu.dot_dimension_numbers<[1], [0], [0], [1], [0, 0, 1, 1], [], []>} : vector<1x32xbf16>, vector<32x512xbf16>, vector<1x512xf32> -> vector<1x512xf32>
    %158 = vector.extract_strided_slice %153 {offsets = [1, 0], sizes = [1, 32], strides = [1, 1]} : vector<2x32xf32> to vector<1x32xf32>
    %c32 = arith.constant 32 : index
    %c0_71 = arith.constant 0 : index
    %159 = vector.load %arg10[%c32, %c0_71] : memref<64x512xbf16, #tpu.memory_space<vmem>>, vector<32x512xbf16>
    %160 = arith.truncf %158 : vector<1x32xf32> to vector<1x32xbf16>
    %cst_72 = arith.constant dense<0.000000e+00> : vector<1x512xf32>
    %161 = tpu.matmul %160, %159, %cst_72 {dimension_numbers = #tpu.dot_dimension_numbers<[1], [0], [0], [1], [0, 0, 1, 1], [], []>} : vector<1x32xbf16>, vector<32x512xbf16>, vector<1x512xf32> -> vector<1x512xf32>
    %162 = arith.addf %157, %161 : vector<1x512xf32>
    %163 = vector.broadcast %12 : vector<1x1xf32> to vector<1x512xf32>
    %164 = arith.addf %162, %163 : vector<1x512xf32>
    %cst_73 = arith.constant 0.000000e+00 : f32
    %165 = vector.broadcast %cst_73 : f32 to vector<1x512xf32>
    %166 = arith.subf %165, %164 : vector<1x512xf32>
    %167 = math.exp %166 : vector<1x512xf32>
    %cst_74 = arith.constant 1.000000e+00 : f32
    %168 = vector.broadcast %cst_74 : f32 to vector<1x512xf32>
    %169 = arith.addf %168, %167 : vector<1x512xf32>
    %170 = tpu.reciprocal %169 {approx = true} : vector<1x512xf32> -> vector<1x512xf32>
    %c0_75 = arith.constant 0 : index
    %c0_76 = arith.constant 0 : index
    %171 = vector.load %arg13[%c0_75, %c0_76] : memref<1x512xf32, #tpu.memory_space<vmem>>, vector<1x512xf32>
    tpu.vector_store %arg13[%c0_75, %c0_76], %170 {strides = array<i32>} : memref<1x512xf32, #tpu.memory_space<vmem>>, vector<1x512xf32>,
    return
  }
}

</mosaic_0001>

<bundles_post_ra>
// kernel: _fused_forward_impl.1
= control target key start
LH: loop header
LB: loop body
LE: loop exit
PB: predicated region body
PF: predicated region fallthrough
CT: control target
= control target key end

     0   :  { %19 = vsyncpa [#allocation3], 0  ;;  %s3293_s0 = inlined_call_operand.vmem [shape: s32[32,1], index: 0, kind: input, shape index: {}]   ;;  %s3294_s1 = inlined_call_operand.vmem [shape: f32[32,32], index: 1, kind: input, shape index: {}]   ;;  %s3295_s2 = inlined_call_operand.vmem [shape: f32[2,128], index: 2, kind: input, shape index: {}]   ;;  %s3296_s3 = inlined_call_operand.hbm [shape: f32[32,128], index: 3, kind: input, shape index: {}]   ;;  %s3297_s4 = inlined_call_operand.vmem [shape: bf16[128,128], index: 4, kind: input, shape index: {}]   ;;  %s3298_s5 = inlined_call_operand.hbm [shape: bf16[128,384], index: 5, kind: input, shape index: {}]   ;;  %s3299_s6 = inlined_call_operand.hbm [shape: bf16[128,128], index: 6, kind: input, shape index: {}]   ;;  %s3300_s7 = inlined_call_operand.hbm [shape: bf16[128,256], index: 7, kind: input, shape index: {}]   ;;  %s3301_s8 = inlined_call_operand.hbm [shape: bf16[256,128], index: 8, kind: input, shape index: {}]   ;;  %s3302_s9 = inlined_call_operand.hbm [shape: bf16[256,256], index: 9, kind: input, shape index: {}]   ;;  %s3303_s10 = inlined_call_operand.hbm [shape: bf16[64,512], index: 10, kind: input, shape index: {}]   ;;  %s3304_s11 = inlined_call_operand.vmem [shape: f32[24,256], index: 11, kind: input, shape index: {}]   ;;  %s3305_s12 = inlined_call_operand.hbm [shape: f32[2,128], index: 12, kind: output, shape index: {0}]   ;;  %s3306_s13 = inlined_call_operand.vmem [shape: f32[1,512], index: 13, kind: output, shape index: {1}]  }
   0x1   :  { %20 = vsyncpa [#allocation6], 0 }
   0x2   :  { %21 = vsyncpa [#allocation9], 0 }
   0x3   :  { %22 = vsyncpa [#allocation12], 0 }
   0x4   :  { %23 = vsyncpa [#allocation4], 0  ;;  %s2865_s25 = smov [#allocation5]   ;;  %s2679_s29 = scalar_lea.hbm %s3298_s5, 3072 }
   0x5   :  { %s49_s26 = sshll.u32 %s2865_s25, 4  ;;  %p2680_p0 = scmp.ne.s32.totalorder %s3298_s5, %s2679_s29  ;;  %s50_s26 = int_to_ptr.vmem [resolvable:$true] %s49_s26 }
   0x6   :  { %p2683_p1 = scmp.lt.u32.totalorder %s2679_s29, %s3298_s5 }
   0x8   :  { %p2685_p2 = pnand %p2683_p1, %p2680_p0 }
   0xa   :  { %2688 = shalt.err (!%p2685_p2)
}
   0xb   :  { %s2689_s17 = scalar_lea.vmem %s50_s26, 3072  ;;  %p2694_p4 = scmp.lt.s32.totalorder %s50_s26, %s50_s26 }
   0xc   :  { %p2690_p3 = scmp.ne.s32.totalorder %s50_s26, %s2689_s17  ;;  %p2695_p5 = scmp.lt.s32.totalorder %s2689_s17, %s2689_s17 }
   0xe   :  { %p2696_p6 = por %p2695_p5, %p2694_p4 }
  0x10   :  { %p2697_p7 = pnand %p2696_p6, %p2690_p3 }
  0x12   :  { %2700 = shalt.err (!%p2697_p7)
}
  0x13   :  { %s2866_s18 = smov 192   ;;  %s2867_s19 = smov 12  }
  0x14   :  { %55 = dma.hbm_to_vmem [thread:$0]  %s3298_s5, 3072, %s50_s26, [#allocation6], %s2866_s18, %s2866_s18, %s2867_s19  }
  0x15   :  { %s2868_s22 = smov [#allocation8]   ;;  %s2869_s24 = smov [#allocation11]  }
  0x16   :  { %s73_s23 = sshll.u32 %s2868_s22, 4  ;;  %s97_s25 = sshll.u32 %s2869_s24, 4  ;;  %s74_s23 = int_to_ptr.vmem [resolvable:$true] %s73_s23  ;;  %s98_s25 = int_to_ptr.vmem [resolvable:$true] %s97_s25 }
  0x17   :  { %s2701_s29 = scalar_lea.hbm %s3300_s7, 2048 }
  0x18   :  { %p2702_p8 = scmp.ne.s32.totalorder %s3300_s7, %s2701_s29  ;;  %p2705_p9 = scmp.lt.u32.totalorder %s2701_s29, %s3300_s7 }
  0x1a   :  { %p2707_p10 = pnand %p2705_p9, %p2702_p8 }
  0x1c   :  { %2710 = shalt.err (!%p2707_p10)
}
  0x1d   :  { %s2711_s5 = scalar_lea.vmem %s74_s23, 2048  ;;  %p2716_p12 = scmp.lt.s32.totalorder %s74_s23, %s74_s23 }
  0x1e   :  { %p2712_p11 = scmp.ne.s32.totalorder %s74_s23, %s2711_s5  ;;  %p2717_p13 = scmp.lt.s32.totalorder %s2711_s5, %s2711_s5 }
  0x20   :  { %p2718_p0 = por %p2717_p13, %p2716_p12 }
  0x22   :  { %p2719_p1 = pnand %p2718_p0, %p2712_p11 }
  0x24   :  { %2722 = shalt.err (!%p2719_p1)
}
  0x25   :  { %s2870_s26 = smov 128   ;;  %s2871_s17 = smov 8  }
  0x26   :  { %79 = dma.hbm_to_vmem [thread:$0]  %s3300_s7, 2048, %s74_s23, [#allocation9], %s2870_s26, %s2870_s26, %s2871_s17  }
  0x27   :  { %s2723_s22 = scalar_lea.hbm %s3302_s9, 4096 }
  0x28   :  { %p2724_p2 = scmp.ne.s32.totalorder %s3302_s9, %s2723_s22  ;;  %p2727_p3 = scmp.lt.u32.totalorder %s2723_s22, %s3302_s9 }
  0x2a   :  { %p2729_p4 = pnand %p2727_p3, %p2724_p2 }
  0x2c   :  { %2732 = shalt.err (!%p2729_p4)
}
  0x2d   :  { %s2733_s30 = scalar_lea.vmem %s98_s25, 4096  ;;  %p2738_p6 = scmp.lt.s32.totalorder %s98_s25, %s98_s25 }
  0x2e   :  { %p2734_p5 = scmp.ne.s32.totalorder %s98_s25, %s2733_s30  ;;  %p2739_p7 = scmp.lt.s32.totalorder %s2733_s30, %s2733_s30 }
  0x30   :  { %p2740_p8 = por %p2739_p7, %p2738_p6 }
  0x32   :  { %p2741_p9 = pnand %p2740_p8, %p2734_p5 }
  0x34   :  { %2744 = shalt.err (!%p2741_p9)
}
  0x35   :  { %103 = dma.hbm_to_vmem [thread:$0]  %s3302_s9, 4096, %s98_s25, [#allocation12], %s2870_s26, %s2870_s26, %s2871_s17  }
  0x36   :  { %s2872_s14 = smov [#allocation2]   ;;  %s2873_s16 = smov [#allocation7]  }
  0x37   :  { %s35_s15 = sshll.u32 %s2872_s14, 4  ;;  %s61_s5 = sshll.u32 %s2873_s16, 4  ;;  %s36_s15 = int_to_ptr.vmem [resolvable:$true] %s35_s15  ;;  %s62_s5 = int_to_ptr.vmem [resolvable:$true] %s61_s5 }
  0x38   :  { %s2745_s20 = scalar_lea.hbm %s3296_s3, 512 }
  0x39   :  { %p2746_p10 = scmp.ne.s32.totalorder %s3296_s3, %s2745_s20  ;;  %p2749_p11 = scmp.lt.u32.totalorder %s2745_s20, %s3296_s3 }
  0x3b   :  { %p2751_p12 = pnand %p2749_p11, %p2746_p10 }
  0x3d   :  { %2754 = shalt.err (!%p2751_p12)
}
  0x3e   :  { %s2755_s9 = scalar_lea.vmem %s36_s15, 512  ;;  %p2760_p0 = scmp.lt.s32.totalorder %s36_s15, %s36_s15 }
  0x3f   :  { %p2756_p13 = scmp.ne.s32.totalorder %s36_s15, %s2755_s9  ;;  %p2761_p1 = scmp.lt.s32.totalorder %s2755_s9, %s2755_s9 }
  0x41   :  { %p2762_p2 = por %p2761_p1, %p2760_p0 }
  0x43   :  { %p2763_p3 = pnand %p2762_p2, %p2756_p13 }
  0x45   :  { %2766 = shalt.err (!%p2763_p3)
}
  0x46   :  { %41 = dma.hbm_to_vmem [thread:$0]  %s3296_s3, 512, %s36_s15, [#allocation3], %s2870_s26, %s2870_s26, %s2871_s17  }
  0x47   :  { %s2767_s7 = scalar_lea.hbm %s3299_s6, 1024 }
  0x48   :  { %p2768_p4 = scmp.ne.s32.totalorder %s3299_s6, %s2767_s7  ;;  %p2771_p5 = scmp.lt.u32.totalorder %s2767_s7, %s3299_s6 }
  0x4a   :  { %p2773_p6 = pnand %p2771_p5, %p2768_p4 }
  0x4c   :  { %2776 = shalt.err (!%p2773_p6)
}
  0x4d   :  { %s2777_s19 = scalar_lea.vmem %s62_s5, 1024  ;;  %p2782_p8 = scmp.lt.s32.totalorder %s62_s5, %s62_s5 }
  0x4e   :  { %p2778_p7 = scmp.ne.s32.totalorder %s62_s5, %s2777_s19  ;;  %p2783_p9 = scmp.lt.s32.totalorder %s2777_s19, %s2777_s19 }
  0x50   :  { %p2784_p10 = por %p2783_p9, %p2782_p8 }
  0x52   :  { %p2785_p11 = pnand %p2784_p10, %p2778_p7 }
  0x54   :  { %2788 = shalt.err (!%p2785_p11)
}
  0x55   :  { %s2874_s3 = smov 64   ;;  %s2875_s26 = smov 4  }
  0x56   :  { %67 = dma.hbm_to_vmem [thread:$0]  %s3299_s6, 1024, %s62_s5, [#allocation6], %s2874_s3, %s2874_s3, %s2875_s26  }
  0x57   :  { %s2876_s20 = smov [#allocation10]   ;;  %s2877_s22 = smov [#allocation13]  }
  0x58   :  { %s85_s21 = sshll.u32 %s2876_s20, 4  ;;  %s109_s24 = sshll.u32 %s2877_s22, 4  ;;  %s86_s21 = int_to_ptr.vmem [resolvable:$true] %s85_s21  ;;  %s110_s24 = int_to_ptr.vmem [resolvable:$true] %s109_s24 }
  0x59   :  { %s2789_s25 = scalar_lea.hbm %s3301_s8, 2048 }
  0x5a   :  { %p2790_p12 = scmp.ne.s32.totalorder %s3301_s8, %s2789_s25  ;;  %p2793_p13 = scmp.lt.u32.totalorder %s2789_s25, %s3301_s8 }
  0x5c   :  { %p2795_p0 = pnand %p2793_p13, %p2790_p12 }
  0x5e   :  { %2798 = shalt.err (!%p2795_p0)
}
  0x5f   :  { %s2799_s6 = scalar_lea.vmem %s86_s21, 2048  ;;  %p2804_p2 = scmp.lt.s32.totalorder %s86_s21, %s86_s21 }
  0x60   :  { %p2800_p1 = scmp.ne.s32.totalorder %s86_s21, %s2799_s6  ;;  %p2805_p3 = scmp.lt.s32.totalorder %s2799_s6, %s2799_s6 }
  0x62   :  { %p2806_p4 = por %p2805_p3, %p2804_p2 }
  0x64   :  { %p2807_p5 = pnand %p2806_p4, %p2800_p1 }
  0x66   :  { %2810 = shalt.err (!%p2807_p5)
}
  0x67   :  { %91 = dma.hbm_to_vmem [thread:$0]  %s3301_s8, 2048, %s86_s21, [#allocation9], %s2874_s3, %s2874_s3, %s2875_s26  }
  0x68   :  { %s2811_s18 = scalar_lea.hbm %s3303_s10, 2048 }
  0x69   :  { %p2812_p6 = scmp.ne.s32.totalorder %s3303_s10, %s2811_s18  ;;  %p2815_p7 = scmp.lt.u32.totalorder %s2811_s18, %s3303_s10 }
  0x6b   :  { %p2817_p8 = pnand %p2815_p7, %p2812_p6 }
  0x6d   :  { %2820 = shalt.err (!%p2817_p8)
}
  0x6e   :  { %s2821_s22 = scalar_lea.vmem %s110_s24, 2048  ;;  %p2826_p10 = scmp.lt.s32.totalorder %s110_s24, %s110_s24 }
  0x6f   :  { %p2822_p9 = scmp.ne.s32.totalorder %s110_s24, %s2821_s22  ;;  %p2827_p11 = scmp.lt.s32.totalorder %s2821_s22, %s2821_s22 }
  0x71   :  { %p2828_p12 = por %p2827_p11, %p2826_p10 }
  0x73   :  { %p2829_p13 = pnand %p2828_p12, %p2822_p9 }
  0x75   :  { %2832 = shalt.err (!%p2829_p13)
}
  0x76   :  { %s2878_s8 = smov 256   ;;  %s2879_s3 = smov 16  }
  0x77   :  { %115 = dma.hbm_to_vmem [thread:$0]  %s3303_s10, 2048, %s110_s24, [#allocation12], %s2878_s8, %s2878_s8, %s2879_s3  }
  0x78   :  { %2855 = dma.done.wait [#allocation3], 512  }
  0x79   :  { %2856 = vsyncadd [#allocation3], 4294966784 }
  0x7a   :  { %2857 = dma.done.wait [#allocation6], 4096  }
  0x7b   :  { %2858 = vsyncadd [#allocation6], 4294963200 }
  0x7c   :  { %2859 = dma.done.wait [#allocation9], 4096  }
  0x7d   :  { %2860 = vsyncadd [#allocation9], 4294963200 }
  0x7e   :  { %2861 = dma.done.wait [#allocation12], 6144  }
  0x7f   :  { %2862 = vsyncadd [#allocation12], 4294961152  ;;  %v2880_v0 = vmov 0   ;;  %v158_v1 = vld [vmem:[%s3293_s0 + $0x10] sm:$0xff]  ;;  %v156_v2 = vld [vmem:[%s3293_s0] sm:$0xff]  ;;  %v160_v26 = vlaneseq  ;;  %vm642_vm6 = vcmask 261120  }
  0x80   :  { %2478 = vset.pattern.permute.xlu1 %v2880_v0  ;;  %2477 = vset.pattern.permute.xlu0 %v2880_v0  ;;  %v159_v3 = vld [vmem:[%s3293_s0 + $0x18] sm:$0xff]  ;;  %v157_v4 = vld [vmem:[%s3293_s0 + $0x8] sm:$0xff]  ;;  %v2479_v5 = vld [vmem:[%s3297_s4] sm:$0xff]   ;;  %v2881_v33 = vmov 1.0|1.0   ;;  %vm2883_vm7 = vmmov 0  }
  0x81   :  { %495 = vmatprep.mubr.bf16.mxu1 %v2880_v0  ;;  %169 = vperm.xlu1 %2478, %v158_v1   ;;  %v2480_v6 = vld [vmem:[%s3297_s4 + $0x8] sm:$0xff]   ;;  %v2481_v7 = vld [vmem:[%s3297_s4 + $0x10] sm:$0xff]   ;;  %v2482_v10 = vld [vmem:[%s3297_s4 + $0x18] sm:$0xff]   ;;  %v161_v29 = vand.u32 127, %v160_v26  ;;  %s2884_s5 = smov [#allocation14]  }
  0x82   :  { %163 = vperm.xlu0 %2477, %v156_v2   ;;  %2344 = vmatprep.subr.bf16.mxu0 %v2479_v5  ;;  %v2487_v8 = vld [vmem:[#allocation5 + $0x4] ss:$12 sps:$4 sm:$0xff]   ;;  %v2489_v9 = vld [vmem:[#allocation5] ss:$12 sps:$4 sm:$0xff]   ;;  %v2491_v11 = vld [vmem:[#allocation5 + $0x1c] ss:$12 sps:$4 sm:$0xff]  }
  0x83   :  { %2345 = vmatpush3.bf16.msra.mxu0 %v2479_v5  ;;  %463 = vmatprep.subr.bf16.mxu1 %v2487_v8  ;;  %v2493_v12 = vld [vmem:[#allocation5 + $0x18] ss:$12 sps:$4 sm:$0xff]   ;;  %v2495_v13 = vld [vmem:[#allocation5 + $0x34] ss:$12 sps:$4 sm:$0xff]   ;;  %v2497_v15 = vld [vmem:[#allocation5 + $0x30] ss:$12 sps:$4 sm:$0xff]  }
  0x84   :  { %2346 = vmatprep.subr.bf16.mxu0 %v2480_v6  ;;  %464 = vmatpush1.bf16.msra.mxu1 %v2489_v9  ;;  %v2483_v14 = vld [vmem:[%s3297_s4 + $0x20] sm:$0xff]   ;;  %v2484_v16 = vld [vmem:[%s3297_s4 + $0x28] sm:$0xff]   ;;  %v2485_v19 = vld [vmem:[%s3297_s4 + $0x30] sm:$0xff]   ;;  %s2101_s23 = sshll.u32 %s2884_s5, 4  ;;  %s2102_s23 = int_to_ptr.vmem [resolvable:$true] %s2101_s23 }
  0x85   :  { %172 = vperm.xlu1 %2478, %v159_v3   ;;  %465 = vmatprep.subr.bf16.mxu1 %v2491_v11  ;;  %v2499_v17 = vld [vmem:[#allocation5 + $0x4c] ss:$12 sps:$4 sm:$0xff]   ;;  %v2501_v18 = vld [vmem:[#allocation5 + $0x48] ss:$12 sps:$4 sm:$0xff]   ;;  %v2503_v20 = vld [vmem:[#allocation5 + $0x64] ss:$12 sps:$4 sm:$0xff]   ;;  %p2838_p1 = scmp.lt.s32.totalorder %s2102_s23, %s2102_s23 }
  0x86   :  { %166 = vperm.xlu0 %2477, %v157_v4   ;;  %v2505_v21 = vld [vmem:[#allocation5 + $0x60] ss:$12 sps:$4 sm:$0xff]   ;;  %v2486_v22 = vld [vmem:[%s3297_s4 + $0x38] sm:$0xff]   ;;  %v2490_v25 = vld [vmem:[#allocation5 + $0x8] ss:$12 sps:$4 sm:$0xff]  }
  0x87   :  { %2347 = vmatpush3.bf16.msra.mxu0 %v2480_v6  ;;  %v2507_v23 = vld [vmem:[#allocation5 + $0x7c] ss:$12 sps:$4 sm:$0xff]   ;;  %v2509_v24 = vld [vmem:[#allocation5 + $0x78] ss:$12 sps:$4 sm:$0xff]   ;;  %v2494_v32 = vld [vmem:[#allocation5 + $0x20] ss:$12 sps:$4 sm:$0xff]  }
  0x88   :  { %2348 = vmatprep.subr.bf16.mxu0 %v2481_v7  ;;  %466 = vmatpush1.bf16.msra.mxu1 %v2493_v12  ;;  %v2498_v34 = vld [vmem:[#allocation5 + $0x38] ss:$12 sps:$4 sm:$0xff]   ;;  %v2502_v35 = vld [vmem:[#allocation5 + $0x50] ss:$12 sps:$4 sm:$0xff]   ;;  %v2506_v36 = vld [vmem:[#allocation5 + $0x68] ss:$12 sps:$4 sm:$0xff]  }
  0x89   :  { %467 = vmatprep.subr.bf16.mxu1 %v2495_v13  ;;  %v2510_v37 = vld [vmem:[#allocation5 + $0x80] ss:$12 sps:$4 sm:$0xff]   ;;  %v2513_v39 = vld [vmem:[#allocation5 + $0x90] ss:$12 sps:$4 sm:$0xff]   ;;  %v2514_v40 = vld [vmem:[#allocation5 + $0x98] ss:$12 sps:$4 sm:$0xff]  }
  0x8a   :  { %v2511_v38 = vld [vmem:[#allocation5 + $0x94] ss:$12 sps:$4 sm:$0xff]   ;;  %v2515_v41 = vld [vmem:[#allocation5 + $0xac] ss:$12 sps:$4 sm:$0xff]   ;;  %v2518_v43 = vld [vmem:[#allocation5 + $0xb0] ss:$12 sps:$4 sm:$0xff]  }
  0x8b   :  { %2349 = vmatpush3.bf16.msra.mxu0 %v2481_v7  ;;  %v2517_v42 = vld [vmem:[#allocation5 + $0xa8] ss:$12 sps:$4 sm:$0xff]   ;;  %v203_v45 = vld [vmem:[#allocation2 + $0x18] sm:$0xff]  ;;  %v200_v47 = vld [vmem:[#allocation2] sm:$0xff] }
  0x8c   :  { %2350 = vmatprep.subr.bf16.mxu0 %v2482_v10  ;;  %468 = vmatpush1.bf16.msra.mxu1 %v2497_v15  ;;  %v201_v48 = vld [vmem:[#allocation2 + $0x8] sm:$0xff]  ;;  %v202_v49 = vld [vmem:[#allocation2 + $0x10] sm:$0xff]  ;;  %v140_v58 = vld [vmem:[%s3304_s11] ss:$0 sm:$0xff] }
  0x8d   :  { %469 = vmatprep.subr.bf16.mxu1 %v2499_v17  ;;  %v141_v60 = vld [vmem:[%s3304_s11 + $0x1] ss:$0 sm:$0xff]  ;;  %v142_v62 = vld [vmem:[%s3304_s11 + $0x2] ss:$0 sm:$0xff] }
  0x8f   :  { %2351 = vmatpush3.bf16.msra.mxu0 %v2482_v10 }
  0x90   :  { %2352 = vmatprep.subr.bf16.mxu0 %v2483_v14  ;;  %470 = vmatpush1.bf16.msra.mxu1 %v2501_v18 }
  0x91   :  { %471 = vmatprep.subr.bf16.mxu1 %v2503_v20 }
  0x93   :  { %2353 = vmatpush3.bf16.msra.mxu0 %v2483_v14 }
  0x94   :  { %2354 = vmatprep.subr.bf16.mxu0 %v2484_v16  ;;  %472 = vmatpush1.bf16.msra.mxu1 %v2505_v21 }
  0x95   :  { %473 = vmatprep.subr.bf16.mxu1 %v2507_v23 }
  0x97   :  { %2355 = vmatpush3.bf16.msra.mxu0 %v2484_v16 }
  0x98   :  { %2356 = vmatprep.subr.bf16.mxu0 %v2485_v19  ;;  %474 = vmatpush1.bf16.msra.mxu1 %v2509_v24 }
  0x99   :  { %475 = vmatprep.subr.bf16.mxu1 %v2511_v38 }
  0x9b   :  { %2357 = vmatpush3.bf16.msra.mxu0 %v2485_v19 }
  0x9c   :  { %2358 = vmatprep.subr.bf16.mxu0 %v2486_v22  ;;  %476 = vmatpush1.bf16.msra.mxu1 %v2513_v39 }
  0x9d   :  { %477 = vmatprep.subr.bf16.mxu1 %v2515_v41 }
  0x9f   :  { %2359 = vmatpush3.bf16.msra.mxu0 %v2486_v22 }
  0xa0   :  { %2364 = vmatprep.subr.bf16.mxu0 %v2490_v25  ;;  %478 = vmatpush1.bf16.msra.mxu1 %v2517_v42 }
 0x100   :  { %v170_v27 = vpop.permute.xlu1 %169 }
 0x101   :  { %v164_v28 = vpop.permute.xlu0 %163  ;;  %vm176_vm0 = vcmp.eq.s32.totalorder %v161_v29, %v170_v27 }
 0x102   :  { %vm174_vm3 = vcmp.eq.s32.totalorder %v161_v29, %v164_v28 }
 0x104   :  { %v173_v30 = vpop.permute.xlu1 %172 }
 0x105   :  { %v167_v31 = vpop.permute.xlu0 %166  ;;  %vm177_vm1 = vcmp.eq.s32.totalorder %v161_v29, %v173_v30 }
 0x106   :  { %vm175_vm2 = vcmp.eq.s32.totalorder %v161_v29, %v167_v31  ;;  %vm2128_vm4 = vmpackc.low %vm177_vm1, %vm176_vm0  ;;  %v634_v31 = vld [vmem:[%s3294_s1] sm:$0xff] }
 0x107   :  { %vm2126_vm5 = vmpackc.low %vm175_vm2, %vm174_vm3 }
 0x108   :  { %2360 = vmatprep.mubr.msk.bf16.mxu0 %vm2126_vm5, %v2881_v33 }
 0x109   :  { %2361 = vmatmul.mubr.msk.bf16.vlgmr.msra.gmra.mrb[0].mxu0 %vm2128_vm4, %v2881_v33 }
 0x10a   :  { %2365 = vmatpush3.bf16.msra.mxu0 %v2490_v25 }
 0x10b   :  { %2366 = vmatprep.subr.bf16.mxu0 %v2494_v32 }
 0x10e   :  { %2367 = vmatpush3.bf16.msra.mxu0 %v2494_v32 }
 0x10f   :  { %2368 = vmatprep.subr.bf16.mxu0 %v2498_v34 }
 0x112   :  { %2369 = vmatpush3.bf16.msra.mxu0 %v2498_v34 }
 0x113   :  { %2370 = vmatprep.subr.bf16.mxu0 %v2502_v35 }
 0x116   :  { %2371 = vmatpush3.bf16.msra.mxu0 %v2502_v35 }
 0x117   :  { %2372 = vmatprep.subr.bf16.mxu0 %v2506_v36 }
 0x11a   :  { %2373 = vmatpush3.bf16.msra.mxu0 %v2506_v36  ;;  %v635_v36 = vld [vmem:[%s3294_s1 + $0x8] sm:$0xff] }
 0x11b   :  { %2374 = vmatprep.subr.bf16.mxu0 %v2510_v37 }
 0x11e   :  { %2375 = vmatpush3.bf16.msra.mxu0 %v2510_v37  ;;  %v636_v37 = vld [vmem:[%s3294_s1 + $0x10] sm:$0xff] }
 0x11f   :  { %2376 = vmatprep.subr.bf16.mxu0 %v2514_v40 }
 0x122   :  { %2377 = vmatpush3.bf16.msra.mxu0 %v2514_v40 }
 0x123   :  { %2378 = vmatprep.subr.bf16.mxu0 %v2518_v43 }
 0x126   :  { %2379 = vmatpush3.bf16.msra.mxu0 %v2518_v43 }
 0x1dc   :  { %v2362_v44 = vpop.f32.mrb[0].mxu0 }
 0x1dd   :  { %v286_v46 = vpop.f32.mrb[1].mxu0  ;;  %v3095_v55 = vadd.f32 %v2362_v44, %v202_v49  ;;  %v637_v44 = vld [vmem:[%s3294_s1 + $0x18] sm:$0xff]  ;;  %s2833_s1 = scalar_lea.vmem %s2102_s23, 32 }
 0x1de   :  { %v2363_v50 = vpop.f32.mrb[2].mxu0  ;;  %v3091_v53 = vadd.f32 %v286_v46, %v200_v47  ;;  %p2834_p0 = scmp.ne.s32.totalorder %s2102_s23, %s2833_s1  ;;  %p2839_p2 = scmp.lt.s32.totalorder %s2833_s1, %s2833_s1 }
 0x1df   :  { %v3089_v51 = vadd.f32 %v2363_v50, %v203_v45  ;;  %v289_v52 = vpop.f32.mrb[3].mxu0 }
 0x1e0   :  { %v3093_v54 = vadd.f32 %v289_v52, %v201_v48  ;;  %p2840_p3 = por %p2839_p2, %p2838_p1 }
 0x1e1   :  { %v334_v57 = vpack.c.bf16 %v3089_v51, %v3095_v55 }
 0x1e2   :  { %v333_v56 = vpack.c.bf16 %v3093_v54, %v3091_v53  ;;  %p2841_p4 = pnand %p2840_p3, %p2834_p0 }
 0x1e4   :  { %496 = vmatmul.mubr.bf16.vlgmr.msra.gmra.mrb[0].mxu1 %v333_v56  ;;  %2380 = vmatprep.mubr.bf16.mxu0 %v333_v56 }
 0x1e5   :  { %2381 = vmatmul.mubr.bf16.vlgmr.msra.gmra.mrb[4].mxu0 %v334_v57  ;;  %505 = vmatprep.mubr.bf16.mxu1 %v2880_v0 }
 0x1e6   :  { %1059 = vmatprep.mubr.bf16.mxu0 %v2880_v0 }
 0x1ec   :  { %506 = vmatmul.mubr.bf16.gmra.mrb[4].mxu1 %v334_v57 }
 0x2b7   :  { %v497_v59 = vpop.f32.mrb[0].mxu1 }
 0x2b8   :  { %v499_v61 = vpop.f32.mrb[1].mxu1  ;;  %v2382_v63 = vpop.f32.mrb[4].mxu0  ;;  %v565_v3 = vadd.f32 %v497_v59, %v140_v58 }
 0x2b9   :  { %v501_v1 = vpop.f32.mrb[2].mxu1  ;;  %v550_v2 = vpop.f32.mrb[5].mxu0  ;;  %v569_v7 = vadd.f32 %v499_v61, %v141_v60  ;;  %v575_v8 = vadd.f32 %v2382_v63, %v142_v62 }
 0x2ba   :  { %v566_v4 = vadd.f32 %v501_v1, %v140_v58  ;;  %v503_v5 = vpop.f32.mrb[3].mxu1  ;;  %v2383_v6 = vpop.f32.mrb[6].mxu0  ;;  %v573_v13 = vadd.f32 %v550_v2, %v142_v62 }
 0x2bb   :  { %v570_v9 = vadd.f32 %v503_v5, %v141_v60  ;;  %v576_v10 = vadd.f32 %v2383_v6, %v142_v62  ;;  %v553_v11 = vpop.f32.mrb[7].mxu0 }
 0x2bc   :  { %v577_v12 = vpack.c.bf16 %v566_v4, %v565_v3  ;;  %v574_v14 = vadd.f32 %v553_v11, %v142_v62 }
 0x2bd   :  { %v579_v15 = vpack.c.bf16 %v570_v9, %v569_v7  ;;  %v690_v16 = vpack.c.bf16 %v576_v10, %v575_v8  ;;  %v2519_v10 = vld [vmem:[#allocation7] sm:$0xff]  }
 0x2be   :  { %v689_v17 = vpack.c.bf16 %v574_v14, %v573_v13  ;;  %2388 = vmatprep.mubr.bf16.mxu1 %v577_v12 }
 0x2bf   :  { %v507_v18 = vpop.f32.mrb[4].mxu1  ;;  %2384 = vmatprep.subr.bf16.mxu1 %v579_v15 }
 0x2c0   :  { %v509_v19 = vpop.f32.mrb[5].mxu1  ;;  %2385 = vmatpush3.bf16.xpose.msra.mxu1 %v579_v15  ;;  %v567_v21 = vadd.f32 %v507_v18, %v140_v58 }
 0x2c1   :  { %v511_v20 = vpop.f32.mrb[6].mxu1  ;;  %v571_v24 = vadd.f32 %v509_v19, %v141_v60 }
 0x2c2   :  { %v568_v22 = vadd.f32 %v511_v20, %v140_v58  ;;  %v513_v23 = vpop.f32.mrb[7].mxu1 }
 0x2c3   :  { %v572_v25 = vadd.f32 %v513_v23, %v141_v60 }
 0x2c4   :  { %v578_v27 = vpack.c.bf16 %v568_v22, %v567_v21 }
 0x2c5   :  { %v580_v28 = vpack.c.bf16 %v572_v25, %v571_v24  ;;  %v2520_v25 = vld [vmem:[#allocation7 + $0x8] sm:$0xff]  }
 0x2c7   :  { %2386 = vmatprep.subr.bf16.mxu1 %v580_v28 }
 0x2c8   :  { %2387 = vmatpush3.bf16.xpose.msra.mxu1 %v580_v28  ;;  %v2522_v28 = vld [vmem:[#allocation7 + $0x18] sm:$0xff]  }
 0x2c9   :  { %2392 = vmatprep.subr.bf16.mxu1 %v689_v17 }
 0x2cf   :  { %2389 = vmatmul.mubr.bf16.vlgmr.msra.gmra.mrb[8].mxu1 %v578_v27  ;;  %v2521_v27 = vld [vmem:[#allocation7 + $0x10] sm:$0xff]  }
 0x2d0   :  { %2393 = vmatpush3.bf16.msra.mxu1 %v689_v17 }
 0x2d1   :  { %2394 = vmatprep.subr.bf16.mxu1 %v690_v16 }
 0x2d4   :  { %2395 = vmatpush3.bf16.msra.mxu1 %v690_v16 }
 0x2d5   :  { %2400 = vmatprep.subr.bf16.mxu1 %v2519_v10 }
 0x3a2   :  { %v2390_v29 = vpop.f32.mrb[8].mxu1 }
 0x3a3   :  { %v615_v30 = vpop.f32.mrb[9].mxu1  ;;  %v632_v32 = vmul.f32 0.088388346, %v2390_v29  ;;  %v2523_v29 = vld [vmem:[#allocation7 + $0x20] sm:$0xff]  }
 0x3a4   :  { %v630_v33 = vmul.f32 0.088388346, %v615_v30  ;;  %v2391_v34 = vpop.f32.mrb[10].mxu1  ;;  %v2524_v30 = vld [vmem:[#allocation7 + $0x28] sm:$0xff]  }
 0x3a5   :  { %v618_v35 = vpop.f32.mrb[11].mxu1  ;;  %v633_v40 = vmul.f32 0.088388346, %v2391_v34  ;;  %v640_v43 = vadd.f32 %v636_v37, %v632_v32  ;;  %v2526_v32 = vld [vmem:[#allocation7 + $0x38] sm:$0xff]  }
 0x3a6   :  { %v631_v38 = vmul.f32 0.088388346, %v618_v35  ;;  %v638_v39 = vadd.f32 %v634_v31, %v630_v33  ;;  %v2525_v31 = vld [vmem:[#allocation7 + $0x30] sm:$0xff]  }
 0x3a7   :  { %v649_v46 = vsel %vm642_vm6, %v640_v43, -inf  ;;  %v641_v47 = vadd.f32 %v637_v44, %v633_v40 }
 0x3a8   :  { %v643_v41 = vsel %vm642_vm6, %v638_v39, -inf  ;;  %v639_v42 = vadd.f32 %v635_v36, %v631_v38 }
 0x3a9   :  { %644 = vmax.xlane.f32.xlu0 %v643_v41  ;;  %v652_v48 = vsel %vm642_vm6, %v641_v47, -inf }
 0x3aa   :  { %v646_v45 = vsel %vm642_vm6, %v639_v42, -inf }
 0x3ab   :  { %647 = vmax.xlane.f32.xlu1 %v646_v45 }
 0x3ad   :  { %650 = vmax.xlane.f32.xlu0 %v649_v46 }
 0x3b1   :  { %653 = vmax.xlane.f32.xlu0 %v652_v48 }
 0x436   :  { %v645_v49 = vpop.xlane.xlu0 %644 }
 0x437   :  { %v655_v50 = vsub.f32 %v638_v39, %v645_v49  ;;  %v143_v39 = vld [vmem:[%s3304_s11 + $0x3] ss:$0 sm:$0xff] }
 0x438   :  { %v648_v52 = vpop.xlane.xlu1 %647 }
 0x439   :  { %v659_v56 = vmul.f32 1.442695, %v655_v50  ;;  %v656_v57 = vsub.f32 %v639_v42, %v648_v52 }
 0x43a   :  { %v651_v58 = vpop.xlane.xlu0 %650 }
 0x43b   :  { %2615 = vpow2.f32 %v659_v56  ;;  %v661_v59 = vmul.f32 1.442695, %v656_v57  ;;  %v657_v60 = vsub.f32 %v640_v43, %v651_v58  ;;  %v2527_v56 = vld [vmem:[#allocation8] ss:$8 sps:$4 sm:$0xff]   ;;  %v2529_v57 = vld [vmem:[#allocation8 + $0x4] ss:$8 sps:$4 sm:$0xff]  }
 0x43c   :  { %v2532_v58 = vld [vmem:[#allocation8 + $0x14] ss:$8 sps:$4 sm:$0xff]   ;;  %1027 = vmatprep.subr.bf16.mxu0 %v2529_v57 }
 0x43d   :  { %2617 = vpow2.f32 %v661_v59  ;;  %v663_v61 = vmul.f32 1.442695, %v657_v60  ;;  %1028 = vmatpush1.bf16.msra.mxu0 %v2527_v56  ;;  %v2530_v59 = vld [vmem:[#allocation8 + $0x10] ss:$8 sps:$4 sm:$0xff]  }
 0x43e   :  { %v654_v62 = vpop.xlane.xlu0 %653  ;;  %1029 = vmatprep.subr.bf16.mxu0 %v2532_v58  ;;  %v2551_v58 = vld [vmem:[#allocation10 + $0x40] sm:$0xff]  }
 0x43f   :  { %2619 = vpow2.f32 %v663_v61  ;;  %v658_v63 = vsub.f32 %v641_v47, %v654_v62 }
 0x441   :  { %v665_v1 = vmul.f32 1.442695, %v658_v63  ;;  %1030 = vmatpush1.bf16.msra.mxu0 %v2530_v59  ;;  %v2552_v59 = vld [vmem:[#allocation10] sm:$0xff]  }
 0x443   :  { %2621 = vpow2.f32 %v665_v1 }
 0x445   :  { %v2616_v2 = vpop.eup %2615 }
 0x446   :  { %v667_v3 = vsel %vm642_vm6, %v2616_v2, 0.0 }
 0x447   :  { %v2618_v4 = vpop.eup %2617  ;;  %668 = vadd.xlane.f32.xlu1 %v667_v3 }
 0x448   :  { %v670_v5 = vsel %vm642_vm6, %v2618_v4, 0.0 }
 0x449   :  { %v2620_v6 = vpop.eup %2619  ;;  %671 = vadd.xlane.f32.xlu0 %v670_v5 }
 0x44a   :  { %v673_v7 = vsel %vm642_vm6, %v2620_v6, 0.0 }
 0x44b   :  { %674 = vadd.xlane.f32.xlu1 %v673_v7 }
 0x44d   :  { %v2622_v8 = vpop.eup %2621 }
 0x44e   :  { %v676_v9 = vsel %vm642_vm6, %v2622_v8, 0.0 }
 0x44f   :  { %677 = vadd.xlane.f32.xlu0 %v676_v9  ;;  %v2535_v9 = vld [vmem:[#allocation8 + $0x24] ss:$8 sps:$4 sm:$0xff]  }
 0x450   :  { %1031 = vmatprep.subr.bf16.mxu0 %v2535_v9  ;;  %v2117_v9 = vld [vmem:[%s3304_s11 + $0x6] ss:$8 sm:$0x3] }
 0x4d4   :  { %v669_v11 = vpop.xlane.xlu1 %668 }
 0x4d5   :  { %2623 = vrcp.f32 %v669_v11  ;;  %v2538_v11 = vld [vmem:[#allocation8 + $0x34] ss:$8 sps:$4 sm:$0xff]  }
 0x4d6   :  { %v672_v12 = vpop.xlane.xlu0 %671 }
 0x4d7   :  { %2625 = vrcp.f32 %v672_v12  ;;  %v2536_v12 = vld [vmem:[#allocation8 + $0x30] ss:$8 sps:$4 sm:$0xff]  }
 0x4d8   :  { %v675_v13 = vpop.xlane.xlu1 %674 }
 0x4d9   :  { %2627 = vrcp.f32 %v675_v13  ;;  %v2541_v13 = vld [vmem:[#allocation8 + $0x44] ss:$8 sps:$4 sm:$0xff]  }
 0x4dc   :  { %v678_v14 = vpop.xlane.xlu0 %677 }
 0x4dd   :  { %2629 = vrcp.f32 %v678_v14  ;;  %v2539_v14 = vld [vmem:[#allocation8 + $0x40] ss:$8 sps:$4 sm:$0xff]  }
 0x4df   :  { %v2624_v15 = vpop.eup %2623 }
 0x4e0   :  { %v683_v17 = vmul.f32 %v2624_v15, %v2616_v2  ;;  %v2544_v15 = vld [vmem:[#allocation8 + $0x54] ss:$8 sps:$4 sm:$0xff]  }
 0x4e1   :  { %v2626_v16 = vpop.eup %2625 }
 0x4e2   :  { %v684_v18 = vmul.f32 %v2626_v16, %v2618_v4  ;;  %v2542_v16 = vld [vmem:[#allocation8 + $0x50] ss:$8 sps:$4 sm:$0xff]  }
 0x4e3   :  { %v2628_v20 = vpop.eup %2627 }
 0x4e4   :  { %v687_v19 = vpack.c.bf16 %v684_v18, %v683_v17  ;;  %v685_v22 = vmul.f32 %v2628_v20, %v2620_v6  ;;  %v2547_v17 = vld [vmem:[#allocation8 + $0x64] ss:$8 sps:$4 sm:$0xff]   ;;  %v2545_v18 = vld [vmem:[#allocation8 + $0x60] ss:$8 sps:$4 sm:$0xff]   ;;  %v2548_v20 = vld [vmem:[#allocation8 + $0x70] ss:$8 sps:$4 sm:$0xff]  }
 0x4e6   :  { %2396 = vmatprep.mubr.msk.bf16.mxu1 %vm642_vm6, %v687_v19  ;;  %v2550_v19 = vld [vmem:[#allocation8 + $0x74] ss:$8 sps:$4 sm:$0xff]  }
 0x4e7   :  { %v2630_v21 = vpop.eup %2629 }
 0x4e8   :  { %v686_v23 = vmul.f32 %v2630_v21, %v2622_v8 }
 0x4ea   :  { %v688_v24 = vpack.c.bf16 %v686_v23, %v685_v22 }
 0x4ec   :  { %2397 = vmatmul.mubr.msk.bf16.vlgmr.msra.gmra.mrb[12].mxu1 %vm642_vm6, %v688_v24 }
 0x4ed   :  { %2401 = vmatpush3.bf16.msra.mxu1 %v2519_v10  ;;  %v2533_v10 = vld [vmem:[#allocation8 + $0x20] ss:$8 sps:$4 sm:$0xff]  }
 0x4ee   :  { %2402 = vmatprep.subr.bf16.mxu1 %v2520_v25  ;;  %1032 = vmatpush1.bf16.msra.mxu0 %v2533_v10 }
 0x4ef   :  { %1033 = vmatprep.subr.bf16.mxu0 %v2538_v11 }
 0x4f1   :  { %2403 = vmatpush3.bf16.msra.mxu1 %v2520_v25 }
 0x4f2   :  { %2404 = vmatprep.subr.bf16.mxu1 %v2521_v27  ;;  %1034 = vmatpush1.bf16.msra.mxu0 %v2536_v12 }
 0x4f3   :  { %1035 = vmatprep.subr.bf16.mxu0 %v2541_v13 }
 0x4f5   :  { %2405 = vmatpush3.bf16.msra.mxu1 %v2521_v27 }
 0x4f6   :  { %2406 = vmatprep.subr.bf16.mxu1 %v2522_v28  ;;  %1036 = vmatpush1.bf16.msra.mxu0 %v2539_v14 }
 0x4f7   :  { %1037 = vmatprep.subr.bf16.mxu0 %v2544_v15 }
 0x4f9   :  { %2407 = vmatpush3.bf16.msra.mxu1 %v2522_v28 }
 0x4fa   :  { %2408 = vmatprep.subr.bf16.mxu1 %v2523_v29  ;;  %1038 = vmatpush1.bf16.msra.mxu0 %v2542_v16 }
 0x4fb   :  { %1039 = vmatprep.subr.bf16.mxu0 %v2547_v17 }
 0x4fd   :  { %2409 = vmatpush3.bf16.msra.mxu1 %v2523_v29 }
 0x4fe   :  { %2410 = vmatprep.subr.bf16.mxu1 %v2524_v30  ;;  %1040 = vmatpush1.bf16.msra.mxu0 %v2545_v18 }
 0x4ff   :  { %1041 = vmatprep.subr.bf16.mxu0 %v2550_v19 }
 0x501   :  { %2411 = vmatpush3.bf16.msra.mxu1 %v2524_v30 }
 0x502   :  { %2412 = vmatprep.subr.bf16.mxu1 %v2525_v31  ;;  %1042 = vmatpush1.bf16.msra.mxu0 %v2548_v20 }
 0x505   :  { %2413 = vmatpush3.bf16.msra.mxu1 %v2525_v31 }
 0x506   :  { %2414 = vmatprep.subr.bf16.mxu1 %v2526_v32 }
 0x509   :  { %2415 = vmatpush3.bf16.msra.mxu1 %v2526_v32 }
 0x50a   :  { %2279 = vmatprep.subr.bf16.mxu1 %v2551_v58 }
 0x5bf   :  { %v2398_v33 = vpop.f32.mrb[12].mxu1 }
 0x5c0   :  { %v731_v34 = vpop.f32.mrb[13].mxu1 }
 0x5c1   :  { %v2399_v35 = vpop.f32.mrb[14].mxu1 }
 0x5c2   :  { %v763_v36 = vpack.c.bf16 %v2399_v35, %v2398_v33  ;;  %v734_v37 = vpop.f32.mrb[15].mxu1  ;;  %v144_v35 = vld [vmem:[%s3304_s11 + $0x4] ss:$0 sm:$0xff] }
 0x5c3   :  { %v762_v38 = vpack.c.bf16 %v734_v37, %v731_v34 }
 0x5c5   :  { %2416 = vmatprep.mubr.bf16.mxu1 %v762_v38 }
 0x5c6   :  { %2417 = vmatmul.mubr.bf16.vlgmr.msra.gmra.mrb[16].mxu1 %v763_v36 }
 0x5c7   :  { %2280 = vmatpush3.bf16.msra.mxu1 %v2552_v59 }
 0x699   :  { %v2418_v40 = vpop.f32.mrb[16].mxu1 }
 0x69a   :  { %v846_v41 = vpop.f32.mrb[17].mxu1  ;;  %v855_v45 = vadd.f32 %v2418_v40, %v143_v39 }
 0x69b   :  { %v847_v42 = vadd.f32 %v846_v41, %v143_v39  ;;  %v2419_v43 = vpop.f32.mrb[18].mxu1  ;;  %v145_v41 = vld [vmem:[%s3304_s11 + $0x5] ss:$0 sm:$0xff] }
 0x69c   :  { %v849_v44 = vpop.f32.mrb[19].mxu1  ;;  %v858_v48 = vadd.f32 %v2419_v43, %v143_v39  ;;  %v863_v50 = vadd.f32 %v855_v45, %v3095_v55 }
 0x69d   :  { %v850_v46 = vadd.f32 %v849_v44, %v143_v39  ;;  %v861_v47 = vadd.f32 %v847_v42, %v3091_v53 }
 0x69e   :  { %v864_v52 = vadd.f32 %v858_v48, %v3089_v51 }
 0x69f   :  { %865 = vadd.xlane.f32.xlu1 %v861_v47  ;;  %v862_v49 = vadd.f32 %v850_v46, %v3093_v54 }
 0x6a1   :  { %867 = vadd.xlane.f32.xlu0 %v862_v49 }
 0x6a3   :  { %869 = vadd.xlane.f32.xlu1 %v863_v50 }
 0x6a5   :  { %871 = vadd.xlane.f32.xlu0 %v864_v52 }
 0x72c   :  { %v866_v53 = vpop.xlane.xlu1 %865 }
 0x72d   :  { %v874_v60 = vmul.f32 0.0078125, %v866_v53  ;;  %v2553_v53 = vld [vmem:[#allocation10 + $0x48] sm:$0xff]  }
 0x72e   :  { %v868_v61 = vpop.xlane.xlu0 %867  ;;  %2281 = vmatprep.subr.bf16.mxu1 %v2553_v53 }
 0x72f   :  { %v878_v62 = vsub.f32 %v861_v47, %v874_v60  ;;  %v875_v54 = vmul.f32 0.0078125, %v868_v61  ;;  %v2554_v60 = vld [vmem:[#allocation10 + $0x8] sm:$0xff]   ;;  %v2555_v61 = vld [vmem:[#allocation10 + $0x50] sm:$0xff]  }
 0x730   :  { %v870_v63 = vpop.xlane.xlu1 %869  ;;  %2282 = vmatpush3.bf16.msra.mxu1 %v2554_v60 }
 0x731   :  { %v879_v1 = vsub.f32 %v862_v49, %v875_v54  ;;  %v876_v55 = vmul.f32 0.0078125, %v870_v63  ;;  %v882_v2 = vmul.f32 %v878_v62, %v878_v62  ;;  %2283 = vmatprep.subr.bf16.mxu1 %v2555_v61  ;;  %v2557_v54 = vld [vmem:[#allocation10 + $0x58] sm:$0xff]  }
 0x732   :  { %v872_v3 = vpop.xlane.xlu0 %871  ;;  %v2558_v63 = vld [vmem:[#allocation10 + $0x18] sm:$0xff]  }
 0x733   :  { %v880_v51 = vsub.f32 %v863_v50, %v876_v55  ;;  %v877_v4 = vmul.f32 0.0078125, %v872_v3  ;;  %886 = vadd.xlane.f32.xlu1 %v882_v2  ;;  %v883_v5 = vmul.f32 %v879_v1, %v879_v1  ;;  %v2560_v55 = vld [vmem:[#allocation10 + $0x20] sm:$0xff]   ;;  %v2561_v2 = vld [vmem:[#allocation10 + $0x68] sm:$0xff]  }
 0x734   :  { %v2562_v3 = vld [vmem:[#allocation10 + $0x28] sm:$0xff]  }
 0x735   :  { %v881_v6 = vsub.f32 %v864_v52, %v877_v4  ;;  %888 = vadd.xlane.f32.xlu0 %v883_v5  ;;  %v884_v7 = vmul.f32 %v880_v51, %v880_v51  ;;  %v2564_v4 = vld [vmem:[#allocation10 + $0x30] sm:$0xff]   ;;  %v2565_v5 = vld [vmem:[#allocation10 + $0x78] sm:$0xff]  }
 0x737   :  { %890 = vadd.xlane.f32.xlu1 %v884_v7  ;;  %v885_v8 = vmul.f32 %v881_v6, %v881_v6  ;;  %v3161_v7 = vshrl.u32 %v160_v26, 7 }
 0x739   :  { %892 = vadd.xlane.f32.xlu0 %v885_v8  ;;  %v939_v8 = vsub.s32 0, %v3161_v7  ;;  %v943_v10 = vsub.s32 1, %v3161_v7 }
 0x73b   :  { %v940_v11 = vrot.slane %v2117_v9, %v939_v8  ;;  %v944_v12 = vrot.slane %v2117_v9, %v943_v10 }
 0x7c0   :  { %v887_v21 = vpop.xlane.xlu1 %886 }
 0x7c1   :  { %v894_v22 = vmul.f32 0.0078125, %v887_v21 }
 0x7c2   :  { %v889_v23 = vpop.xlane.xlu0 %888 }
 0x7c3   :  { %v898_v24 = vadd.f32 1e-12, %v894_v22  ;;  %v895_v25 = vmul.f32 0.0078125, %v889_v23 }
 0x7c4   :  { %v891_v27 = vpop.xlane.xlu1 %890 }
 0x7c5   :  { %2631 = vrsqrt.f32 %v898_v24  ;;  %v899_v28 = vadd.f32 1e-12, %v895_v25  ;;  %v896_v29 = vmul.f32 0.0078125, %v891_v27 }
 0x7c6   :  { %v893_v30 = vpop.xlane.xlu0 %892 }
 0x7c7   :  { %2633 = vrsqrt.f32 %v899_v28  ;;  %v900_v31 = vadd.f32 1e-12, %v896_v29  ;;  %v897_v32 = vmul.f32 0.0078125, %v893_v30 }
 0x7c9   :  { %2635 = vrsqrt.f32 %v900_v31  ;;  %v901_v33 = vadd.f32 1e-12, %v897_v32 }
 0x7cb   :  { %2637 = vrsqrt.f32 %v901_v33 }
 0x7cf   :  { %v2632_v34 = vpop.eup %2631 }
 0x7d0   :  { %v906_v36 = vmul.f32 %v2632_v34, %v878_v62  ;;  %v2556_v62 = vld [vmem:[#allocation10 + $0x10] sm:$0xff]  }
 0x7d1   :  { %v2634_v37 = vpop.eup %2633  ;;  %2284 = vmatpush3.bf16.msra.mxu1 %v2556_v62 }
 0x7d2   :  { %v907_v38 = vmul.f32 %v2634_v37, %v879_v1  ;;  %v910_v39 = vmul.f32 %v906_v36, %v144_v35  ;;  %2285 = vmatprep.subr.bf16.mxu1 %v2557_v54  ;;  %v2559_v1 = vld [vmem:[#allocation10 + $0x60] sm:$0xff]  }
 0x7d3   :  { %v2636_v40 = vpop.eup %2635 }
 0x7d4   :  { %v911_v42 = vmul.f32 %v907_v38, %v144_v35  ;;  %v3147_v44 = vadd.f32 %v910_v39, %v145_v41  ;;  %v908_v46 = vmul.f32 %v2636_v40, %v880_v51  ;;  %v2563_v51 = vld [vmem:[#allocation10 + $0x70] sm:$0xff]  }
 0x7d5   :  { %v2638_v43 = vpop.eup %2637  ;;  %2286 = vmatpush3.bf16.msra.mxu1 %v2558_v63 }
 0x7d6   :  { %v3149_v45 = vadd.f32 %v911_v42, %v145_v41  ;;  %v909_v47 = vmul.f32 %v2638_v43, %v881_v6  ;;  %v912_v50 = vmul.f32 %v908_v46, %v144_v35  ;;  %2287 = vmatprep.subr.bf16.mxu1 %v2559_v1  ;;  %v2566_v6 = vld [vmem:[#allocation10 + $0x38] sm:$0xff]  }
 0x7d8   :  { %v934_v48 = vpack.c.bf16 %v3149_v45, %v3147_v44  ;;  %v913_v49 = vmul.f32 %v909_v47, %v144_v35  ;;  %v3156_v56 = vadd.f32 %v912_v50, %v145_v41 }
 0x7d9   :  { %2288 = vmatpush3.bf16.msra.mxu1 %v2560_v55 }
 0x7da   :  { %1060 = vmatmul.mubr.bf16.vlgmr.msra.gmra.mrb[8].mxu0 %v934_v48  ;;  %v3154_v52 = vadd.f32 %v913_v49, %v145_v41  ;;  %2289 = vmatprep.subr.bf16.mxu1 %v2561_v2 }
 0x7db   :  { %1069 = vmatprep.mubr.bf16.mxu0 %v2880_v0 }
 0x7dc   :  { %v935_v57 = vpack.c.bf16 %v3154_v52, %v3156_v56 }
 0x7dd   :  { %2290 = vmatpush3.bf16.msra.mxu1 %v2562_v3 }
 0x7de   :  { %2291 = vmatprep.subr.bf16.mxu1 %v2563_v51 }
 0x7e1   :  { %2292 = vmatpush3.bf16.msra.mxu1 %v2564_v4 }
 0x7e2   :  { %1070 = vmatmul.mubr.bf16.gmra.mrb[12].mxu0 %v935_v57  ;;  %2293 = vmatprep.subr.bf16.mxu1 %v2565_v5 }
 0x7e5   :  { %2294 = vmatpush3.bf16.msra.mxu1 %v2566_v6 }
 0x8ad   :  { %v1061_v13 = vpop.f32.mrb[8].mxu0 }
 0x8ae   :  { %v3168_v14 = vadd.f32 %v1061_v13, %v940_v11  ;;  %v1063_v15 = vpop.f32.mrb[9].mxu0 }
 0x8af   :  { %v3170_v16 = vadd.f32 %v1063_v15, %v944_v12  ;;  %v1065_v17 = vpop.f32.mrb[10].mxu0 }
 0x8b0   :  { %v1088_v18 = vmul.f32 0.044715, %v3168_v14  ;;  %v3173_v19 = vadd.f32 %v1065_v17, %v940_v11  ;;  %v1067_v20 = vpop.f32.mrb[11].mxu0 }
 0x8b1   :  { %v1089_v21 = vmul.f32 0.044715, %v3170_v16  ;;  %v3176_v22 = vadd.f32 %v1067_v20, %v944_v12 }
 0x8b2   :  { %v1096_v23 = vmul.f32 %v1088_v18, %v3168_v14  ;;  %v1090_v24 = vmul.f32 0.044715, %v3173_v19 }
 0x8b3   :  { %v1097_v25 = vmul.f32 %v1089_v21, %v3170_v16  ;;  %v1091_v27 = vmul.f32 0.044715, %v3176_v22  ;;  %v1080_v21 = vmul.f32 0.5, %v3168_v14 }
 0x8b4   :  { %v1104_v28 = vmul.f32 %v1096_v23, %v3168_v14  ;;  %v1098_v29 = vmul.f32 %v1090_v24, %v3173_v19  ;;  %v1082_v23 = vmul.f32 0.5, %v3173_v19 }
 0x8b5   :  { %v1105_v30 = vmul.f32 %v1097_v25, %v3170_v16  ;;  %v1099_v31 = vmul.f32 %v1091_v27, %v3176_v22  ;;  %v1071_v32 = vpop.f32.mrb[12].mxu0  ;;  %v1081_v25 = vmul.f32 0.5, %v3170_v16  ;;  %v1083_v27 = vmul.f32 0.5, %v3176_v22 }
 0x8b6   :  { %v1112_v33 = vadd.f32 %v1104_v28, %v3168_v14  ;;  %v1106_v34 = vmul.f32 %v1098_v29, %v3173_v19  ;;  %v3188_v35 = vadd.f32 %v1071_v32, %v940_v11  ;;  %v1073_v36 = vpop.f32.mrb[13].mxu0 }
 0x8b7   :  { %v1107_v37 = vmul.f32 %v1099_v31, %v3176_v22  ;;  %v3191_v38 = vadd.f32 %v1073_v36, %v944_v12  ;;  %v1075_v39 = vpop.f32.mrb[14].mxu0  ;;  %v1113_v40 = vadd.f32 %v1105_v30, %v3170_v16 }
 0x8b8   :  { %v1120_v41 = vmul.f32 0.7978846, %v1112_v33  ;;  %v1114_v42 = vadd.f32 %v1106_v34, %v3173_v19  ;;  %v1092_v43 = vmul.f32 0.044715, %v3188_v35  ;;  %v1076_v46 = vadd.f32 %v1075_v39, %v940_v11  ;;  %v1077_v47 = vpop.f32.mrb[15].mxu0 }
 0x8b9   :  { %v1093_v48 = vmul.f32 0.044715, %v3191_v38  ;;  %v1078_v49 = vadd.f32 %v1077_v47, %v944_v12  ;;  %v1115_v50 = vadd.f32 %v1107_v37, %v3176_v22  ;;  %v1121_v57 = vmul.f32 0.7978846, %v1113_v40 }
 0x8ba   :  { %2639 = vtanh.f32 %v1120_v41  ;;  %v1122_v58 = vmul.f32 0.7978846, %v1114_v42  ;;  %v1100_v59 = vmul.f32 %v1092_v43, %v3188_v35  ;;  %v1094_v53 = vmul.f32 0.044715, %v1076_v46 }
 0x8bb   :  { %v1101_v60 = vmul.f32 %v1093_v48, %v3191_v38  ;;  %v1095_v61 = vmul.f32 0.044715, %v1078_v49  ;;  %v1123_v62 = vmul.f32 0.7978846, %v1115_v50  ;;  %2641 = vtanh.f32 %v1121_v57 }
 0x8bc   :  { %2643 = vtanh.f32 %v1122_v58  ;;  %v1108_v54 = vmul.f32 %v1100_v59, %v3188_v35  ;;  %v1102_v63 = vmul.f32 %v1094_v53, %v1076_v46  ;;  %v1084_v19 = vmul.f32 0.5, %v3188_v35 }
 0x8bd   :  { %v1109_v1 = vmul.f32 %v1101_v60, %v3191_v38  ;;  %v1103_v55 = vmul.f32 %v1095_v61, %v1078_v49  ;;  %2645 = vtanh.f32 %v1123_v62  ;;  %v1086_v16 = vmul.f32 0.5, %v1076_v46  ;;  %v148_v61 = vld [vmem:[%s3304_s11 + $0x7] ss:$0 sm:$0xff] }
 0x8be   :  { %v1110_v2 = vmul.f32 %v1102_v63, %v1076_v46  ;;  %v1116_v3 = vadd.f32 %v1108_v54, %v3188_v35  ;;  %v1085_v22 = vmul.f32 0.5, %v3191_v38  ;;  %v1087_v43 = vmul.f32 0.5, %v1078_v49 }
 0x8bf   :  { %v1111_v51 = vmul.f32 %v1103_v55, %v1078_v49  ;;  %v1117_v4 = vadd.f32 %v1109_v1, %v3191_v38 }
 0x8c0   :  { %v1118_v5 = vadd.f32 %v1110_v2, %v1076_v46  ;;  %v1124_v6 = vmul.f32 0.7978846, %v1116_v3 }
 0x8c1   :  { %v1119_v8 = vadd.f32 %v1111_v51, %v1078_v49  ;;  %v1125_v9 = vmul.f32 0.7978846, %v1117_v4 }
 0x8c2   :  { %v1126_v10 = vmul.f32 0.7978846, %v1118_v5  ;;  %2647 = vtanh.f32 %v1124_v6 }
 0x8c3   :  { %v1127_v11 = vmul.f32 0.7978846, %v1119_v8  ;;  %2649 = vtanh.f32 %v1125_v9 }
 0x8c4   :  { %v2640_v12 = vpop.eup %2639  ;;  %2651 = vtanh.f32 %v1126_v10 }
 0x8c5   :  { %v2642_v13 = vpop.eup %2641  ;;  %v1136_v15 = vadd.f32 1.0, %v2640_v12  ;;  %2653 = vtanh.f32 %v1127_v11 }
 0x8c6   :  { %v2644_v17 = vpop.eup %2643  ;;  %v1137_v18 = vadd.f32 1.0, %v2642_v13 }
 0x8c7   :  { %v2646_v20 = vpop.eup %2645  ;;  %v1138_v24 = vadd.f32 1.0, %v2644_v17  ;;  %v1144_v29 = vmul.f32 %v1136_v15, %v1080_v21 }
 0x8c8   :  { %v1139_v28 = vadd.f32 1.0, %v2646_v20  ;;  %v1145_v31 = vmul.f32 %v1137_v18, %v1081_v25 }
 0x8c9   :  { %v1146_v30 = vmul.f32 %v1138_v24, %v1082_v23 }
 0x8ca   :  { %v1147_v32 = vmul.f32 %v1139_v28, %v1083_v27 }
 0x8cb   :  { %v1184_v33 = vpack.c.bf16 %v1146_v30, %v1144_v29  ;;  %v153_v29 = vld [vmem:[%s3304_s11 + $0x14] ss:$0 sm:$0xff]  ;;  %v2882_v30 = vmov 0.0  }
 0x8cc   :  { %v2648_v34 = vpop.eup %2647  ;;  %v1185_v36 = vpack.c.bf16 %v1147_v32, %v1145_v31  ;;  %2420 = vmatprep.subr.bf16.mxu0 %v2882_v30  ;;  %2428 = vmatprep.subr.bf16.mxu1 %v2882_v30 }
 0x8cd   :  { %v2650_v37 = vpop.eup %2649  ;;  %v1140_v39 = vadd.f32 1.0, %v2648_v34  ;;  %2424 = vmatprep.mubr.msk.bf16.mxu0 %vm2883_vm7, %v2882_v30 }
 0x8ce   :  { %v2652_v40 = vpop.eup %2651  ;;  %1316 = vmatprep.mubr.bf16.mxu1 %v1185_v36  ;;  %v1141_v14 = vadd.f32 1.0, %v2650_v37 }
 0x8cf   :  { %v2654_v41 = vpop.eup %2653  ;;  %1317 = vmatmul.mubr.bf16.vlgmr.msra.gmra.mrb[20].mxu1 %v1184_v33  ;;  %v1142_v42 = vadd.f32 1.0, %v2652_v40  ;;  %v1148_v48 = vmul.f32 %v1140_v39, %v1084_v19 }
 0x8d0   :  { %v1143_v47 = vadd.f32 1.0, %v2654_v41  ;;  %v1149_v57 = vmul.f32 %v1141_v14, %v1085_v22  ;;  %v149_v22 = vld [vmem:[%s3304_s11 + $0x10] ss:$0 sm:$0xff] }
 0x8d1   :  { %v1150_v50 = vmul.f32 %v1142_v42, %v1086_v16 }
 0x8d2   :  { %v1151_v58 = vmul.f32 %v1143_v47, %v1087_v43 }
 0x8d3   :  { %v1186_v59 = vpack.c.bf16 %v1150_v50, %v1148_v48 }
 0x8d4   :  { %v1187_v53 = vpack.c.bf16 %v1151_v58, %v1149_v57  ;;  %v150_v57 = vld [vmem:[%s3304_s11 + $0x11] ss:$0 sm:$0xff] }
 0x8d6   :  { %1324 = vmatprep.mubr.bf16.mxu1 %v1187_v53 }
 0x8d7   :  { %1325 = vmatmul.mubr.bf16.gmra.mrb[24].mxu1 %v1186_v59 }
 0x8d8   :  { %2444 = vmatprep.mubr.msk.bf16.mxu1 %vm2883_vm7, %v2882_v30 }
 0x9a2   :  { %v2295_v60 = vpop.f32.mrb[20].mxu1 }
 0x9a3   :  { %v2296_v35 = vpop.f32.mrb[21].mxu1 }
 0x9a4   :  { %v2297_v46 = vadd.f32 %v2296_v35, %v2295_v60  ;;  %v2298_v62 = vpop.f32.mrb[22].mxu1 }
 0x9a5   :  { %v2299_v54 = vpop.f32.mrb[23].mxu1 }
 0x9a6   :  { %v1319_v38 = vadd.f32 %v2297_v46, %v148_v61  ;;  %v2300_v49 = vadd.f32 %v2299_v54, %v2298_v62 }
 0x9a8   :  { %v1322_v63 = vadd.f32 %v2300_v49, %v148_v61  ;;  %v1333_v1 = vadd.f32 %v1319_v38, %v3147_v44 }
 0x9aa   :  { %1337 = vadd.xlane.f32.xlu1 %v1333_v1  ;;  %v2301_v55 = vpop.f32.mrb[24].mxu1  ;;  %v1334_v2 = vadd.f32 %v1322_v63, %v3149_v45 }
 0x9ab   :  { %v2302_v3 = vpop.f32.mrb[25].mxu1 }
 0x9ac   :  { %v2303_v51 = vadd.f32 %v2302_v3, %v2301_v55  ;;  %1339 = vadd.xlane.f32.xlu0 %v1334_v2  ;;  %v2304_v4 = vpop.f32.mrb[26].mxu1  ;;  %v2567_v55 = vld [vmem:[#allocation11 + $0x80] ss:$8 sps:$4 sm:$0xff]  }
 0x9ad   :  { %v2305_v5 = vpop.f32.mrb[27].mxu1 }
 0x9ae   :  { %v1327_v6 = vadd.f32 %v2303_v51, %v148_v61  ;;  %v2306_v8 = vadd.f32 %v2305_v5, %v2304_v4  ;;  %v2568_v51 = vld [vmem:[#allocation11] ss:$8 sps:$4 sm:$0xff]   ;;  %v2569_v4 = vld [vmem:[#allocation11 + $0x90] ss:$8 sps:$4 sm:$0xff]  }
 0x9af   :  { %v2570_v5 = vld [vmem:[#allocation11 + $0x10] ss:$8 sps:$4 sm:$0xff]  }
 0x9b0   :  { %v1330_v9 = vadd.f32 %v2306_v8, %v148_v61  ;;  %v1335_v10 = vadd.f32 %v1327_v6, %v3156_v56  ;;  %v2571_v6 = vld [vmem:[#allocation11 + $0xa0] ss:$8 sps:$4 sm:$0xff]  }
 0x9b1   :  { %v2572_v8 = vld [vmem:[#allocation11 + $0x20] ss:$8 sps:$4 sm:$0xff]  }
 0x9b2   :  { %1341 = vadd.xlane.f32.xlu1 %v1335_v10  ;;  %v1336_v11 = vadd.f32 %v1330_v9, %v3154_v52  ;;  %v2573_v9 = vld [vmem:[#allocation11 + $0xb0] ss:$8 sps:$4 sm:$0xff]  }
 0x9b4   :  { %1343 = vadd.xlane.f32.xlu0 %v1336_v11 }
 0xa37   :  { %v1338_v12 = vpop.xlane.xlu1 %1337 }
 0xa38   :  { %v1345_v44 = vmul.f32 0.0078125, %v1338_v12  ;;  %v2576_v12 = vld [vmem:[#allocation11 + $0x40] ss:$8 sps:$4 sm:$0xff]  }
 0xa39   :  { %v1340_v13 = vpop.xlane.xlu0 %1339 }
 0xa3a   :  { %v1349_v15 = vsub.f32 %v1333_v1, %v1345_v44  ;;  %v1346_v17 = vmul.f32 0.0078125, %v1340_v13  ;;  %v155_v1 = vld [vmem:[%s3304_s11 + $0x20] sm:$0x3]  ;;  %v2577_v44 = vld [vmem:[#allocation11 + $0xd0] ss:$8 sps:$4 sm:$0xff]  }
 0xa3b   :  { %v1389_v3 = vpack.c.bf16 %v155_v1, %v155_v1  ;;  %v2578_v13 = vld [vmem:[#allocation11 + $0x50] ss:$8 sps:$4 sm:$0xff]  }
 0xa3c   :  { %v1350_v45 = vsub.f32 %v1334_v2, %v1346_v17  ;;  %v1353_v18 = vmul.f32 %v1349_v15, %v1349_v15  ;;  %v2580_v17 = vld [vmem:[#allocation11 + $0x60] ss:$8 sps:$4 sm:$0xff]  }
 0xa3e   :  { %1357 = vadd.xlane.f32.xlu1 %v1353_v18  ;;  %v1354_v20 = vmul.f32 %v1350_v45, %v1350_v45  ;;  %v2582_v18 = vld [vmem:[#allocation11 + $0x70] ss:$8 sps:$4 sm:$0xff]  }
 0xa3f   :  { %v1342_v21 = vpop.xlane.xlu1 %1341 }
 0xa40   :  { %v1347_v23 = vmul.f32 0.0078125, %v1342_v21  ;;  %1359 = vadd.xlane.f32.xlu0 %v1354_v20  ;;  %v1435_v20 = vld [vmem:[%s3295_s2] sm:$0x3] }
 0xa41   :  { %v1344_v24 = vpop.xlane.xlu0 %1343  ;;  %v1469_v21 = vpack.c.bf16 %v1435_v20, %v1435_v20 }
 0xa42   :  { %v1351_v25 = vsub.f32 %v1335_v10, %v1347_v23  ;;  %v1348_v27 = vmul.f32 0.0078125, %v1344_v24  ;;  %v2574_v10 = vld [vmem:[#allocation11 + $0x30] ss:$8 sps:$4 sm:$0xff]   ;;  %v2583_v23 = vld [vmem:[#allocation11 + $0x4] ss:$8 sps:$4 sm:$0xff]  }
 0xa43   :  { %2429 = vmatpush3.bf16.msra.mxu1 %v2583_v23  ;;  %v2584_v24 = vld [vmem:[#allocation11 + $0x14] ss:$8 sps:$4 sm:$0xff]  }
 0xa44   :  { %v1352_v56 = vsub.f32 %v1336_v11, %v1348_v27  ;;  %v1355_v28 = vmul.f32 %v1351_v25, %v1351_v25  ;;  %v2575_v11 = vld [vmem:[#allocation11 + $0xc0] ss:$8 sps:$4 sm:$0xff]   ;;  %2430 = vmatprep.subr.bf16.mxu1 %v2882_v30  ;;  %v2586_v27 = vld [vmem:[#allocation11 + $0x34] ss:$8 sps:$4 sm:$0xff]  }
 0xa46   :  { %1361 = vadd.xlane.f32.xlu1 %v1355_v28  ;;  %v1356_v52 = vmul.f32 %v1352_v56, %v1352_v56  ;;  %v2588_v28 = vld [vmem:[#allocation11 + $0x54] ss:$8 sps:$4 sm:$0xff]  }
 0xa47   :  { %2431 = vmatpush3.bf16.msra.mxu1 %v2584_v24 }
 0xa48   :  { %1363 = vadd.xlane.f32.xlu0 %v1356_v52  ;;  %2432 = vmatprep.subr.bf16.mxu1 %v2882_v30 }
 0xa57   :  { %2034 = vperm.xlu1 %2478, %v153_v29   ;;  %v154_v29 = vld [vmem:[%s3304_s11 + $0x10] sm:$0x60] }
 0xacb   :  { %v1358_v31 = vpop.xlane.xlu1 %1357 }
 0xacc   :  { %v1365_v32 = vmul.f32 0.0078125, %v1358_v31 }
 0xacd   :  { %v1360_v33 = vpop.xlane.xlu0 %1359 }
 0xace   :  { %v1369_v34 = vadd.f32 1e-12, %v1365_v32  ;;  %v1366_v36 = vmul.f32 0.0078125, %v1360_v33 }
 0xad0   :  { %2655 = vrsqrt.f32 %v1369_v34  ;;  %v1370_v37 = vadd.f32 1e-12, %v1366_v36  ;;  %v1713_v36 = vpack.c.bf16 %v154_v29, %v154_v29 }
 0xad2   :  { %2657 = vrsqrt.f32 %v1370_v37  ;;  %v1715_v37 = vshrl.u32 %v1713_v36, 16 }
 0xad3   :  { %v1362_v39 = vpop.xlane.xlu1 %1361 }
 0xad4   :  { %v1367_v40 = vmul.f32 0.0078125, %v1362_v39  ;;  %v1718_v39 = vshll.u32 %v1713_v36, 16 }
 0xad5   :  { %v1364_v14 = vpop.xlane.xlu0 %1363 }
 0xad6   :  { %v1371_v41 = vadd.f32 1e-12, %v1367_v40  ;;  %v1368_v19 = vmul.f32 0.0078125, %v1364_v14  ;;  %v1717_v40 = vrot.slane %v1715_v37, 2  ;;  %v1720_v14 = vrot.slane %v1718_v39, 3 }
 0xad8   :  { %2659 = vrsqrt.f32 %v1371_v41  ;;  %v1372_v16 = vadd.f32 1e-12, %v1368_v19  ;;  %v1721_v41 = vor.u32 %v1720_v14, %v1717_v40  ;;  %v2589_v19 = vld [vmem:[#allocation11 + $0x64] ss:$8 sps:$4 sm:$0xff]  }
 0xada   :  { %v2656_v42 = vpop.eup %2655  ;;  %2661 = vrsqrt.f32 %v1372_v16  ;;  %v2590_v16 = vld [vmem:[#allocation11 + $0x74] ss:$8 sps:$4 sm:$0xff]  }
 0xadb   :  { %v1377_v43 = vmul.f32 %v2656_v42, %v1349_v15  ;;  %v2579_v15 = vld [vmem:[#allocation11 + $0xe0] ss:$8 sps:$4 sm:$0xff]   ;;  %v2593_v42 = vld [vmem:[#allocation13 + $0x44] ss:$16 sps:$4 sm:$0xff]  }
 0xadc   :  { %v2658_v47 = vpop.eup %2657 }
 0xadd   :  { %v1378_v48 = vmul.f32 %v2658_v47, %v1350_v45  ;;  %v1381_v50 = vmul.f32 %v1377_v43, %v149_v22  ;;  %v2581_v45 = vld [vmem:[#allocation11 + $0xf0] ss:$8 sps:$4 sm:$0xff]   ;;  %v2596_v43 = vld [vmem:[#allocation13 + $0x4c] ss:$16 sps:$4 sm:$0xff]  }
 0xade   :  { %v2600_v47 = vld [vmem:[#allocation13 + $0x68] ss:$16 sps:$4 sm:$0xff]  }
 0xadf   :  { %v1382_v58 = vmul.f32 %v1378_v48, %v149_v22  ;;  %v1385_v59 = vadd.f32 %v1381_v50, %v150_v57  ;;  %v2602_v48 = vld [vmem:[#allocation13 + $0x6c] ss:$16 sps:$4 sm:$0xff]  }
 0xae0   :  { %v2608_v50 = vld [vmem:[#allocation13 + $0xc] ss:$16 sps:$4 sm:$0xff]  }
 0xae1   :  { %v1386_v53 = vadd.f32 %v1382_v58, %v150_v57  ;;  %v151_v58 = vld [vmem:[%s3304_s11 + $0x12] ss:$0 sm:$0xff] }
 0xae2   :  { %v2660_v60 = vpop.eup %2659 }
 0xae3   :  { %v1379_v61 = vmul.f32 %v2660_v60, %v1351_v25  ;;  %v3232_v35 = vpack.c.bf16 %v1386_v53, %v1385_v59  ;;  %v2585_v25 = vld [vmem:[#allocation11 + $0x24] ss:$8 sps:$4 sm:$0xff]  }
 0xae4   :  { %v2662_v46 = vpop.eup %2661  ;;  %2433 = vmatpush3.bf16.msra.mxu1 %v2585_v25 }
 0xae5   :  { %v1380_v62 = vmul.f32 %v2662_v46, %v1352_v56  ;;  %2421 = vmatpush3.bf16.msra.mxu0 %v3232_v35  ;;  %v1383_v54 = vmul.f32 %v1379_v61, %v149_v22  ;;  %2434 = vmatprep.subr.bf16.mxu1 %v2882_v30  ;;  %v2587_v56 = vld [vmem:[#allocation11 + $0x44] ss:$8 sps:$4 sm:$0xff]   ;;  %v2591_v46 = vld [vmem:[#allocation13 + $0x40] ss:$16 sps:$4 sm:$0xff]  }
 0xae6   :  { %2422 = vmatprep.subr.bf16.mxu0 %v2882_v30 }
 0xae7   :  { %v1384_v38 = vmul.f32 %v1380_v62, %v149_v22  ;;  %v1387_v49 = vadd.f32 %v1383_v54, %v150_v57  ;;  %v2594_v22 = vld [vmem:[#allocation13 + $0x48] ss:$16 sps:$4 sm:$0xff]   ;;  %v2599_v54 = vld [vmem:[#allocation13 + $0x64] ss:$16 sps:$4 sm:$0xff]  }
 0xae8   :  { %2435 = vmatpush3.bf16.msra.mxu1 %v2586_v27 }
 0xae9   :  { %v1388_v63 = vadd.f32 %v1384_v38, %v150_v57  ;;  %2436 = vmatprep.subr.bf16.mxu1 %v2882_v30  ;;  %v2597_v38 = vld [vmem:[#allocation13 + $0x60] ss:$16 sps:$4 sm:$0xff]  }
 0xaeb   :  { %v3239_v2 = vpack.c.bf16 %v1388_v63, %v1387_v49  ;;  %v2605_v49 = vld [vmem:[#allocation13 + $0x4] ss:$16 sps:$4 sm:$0xff]  }
 0xaec   :  { %2437 = vmatpush3.bf16.msra.mxu1 %v2587_v56 }
 0xaed   :  { %2423 = vmatpush3.bf16.msra.mxu0 %v3239_v2  ;;  %2438 = vmatprep.subr.bf16.mxu1 %v2882_v30 }
 0xaee   :  { %2310 = vmatprep.subr.bf16.mxu0 %v2567_v55 }
 0xaf0   :  { %2425 = vmatmul.mubr.msk.bf16.vlgmr.msra.gmra.mrb[16].mxu0 %vm642_vm6, %v1389_v3  ;;  %2439 = vmatpush3.bf16.msra.mxu1 %v2588_v28  ;;  %v2603_v3 = vld [vmem:[#allocation13] ss:$16 sps:$4 sm:$0xff]  }
 0xaf1   :  { %2311 = vmatpush3.bf16.msra.mxu0 %v2568_v51  ;;  %1598 = vmatprep.mubr.bf16.mxu0 %v1469_v21  ;;  %v2606_v51 = vld [vmem:[#allocation13 + $0x8] ss:$16 sps:$4 sm:$0xff]  }
 0xaf2   :  { %2312 = vmatprep.subr.bf16.mxu0 %v2569_v4  ;;  %2440 = vmatprep.subr.bf16.mxu1 %v2882_v30 }
 0xaf4   :  { %2441 = vmatpush3.bf16.msra.mxu1 %v2589_v19 }
 0xaf5   :  { %2313 = vmatpush3.bf16.msra.mxu0 %v2570_v5  ;;  %2442 = vmatprep.subr.bf16.mxu1 %v2882_v30 }
 0xaf6   :  { %2314 = vmatprep.subr.bf16.mxu0 %v2571_v6  ;;  %v2611_v6 = vld [vmem:[#allocation13 + $0x24] ss:$16 sps:$4 sm:$0xff]  }
 0xaf8   :  { %2443 = vmatpush3.bf16.msra.mxu1 %v2590_v16 }
 0xaf9   :  { %2315 = vmatpush3.bf16.msra.mxu0 %v2572_v8  ;;  %1826 = vmatprep.subr.bf16.mxu1 %v2593_v42  ;;  %v2614_v8 = vld [vmem:[#allocation13 + $0x2c] ss:$16 sps:$4 sm:$0xff]  }
 0xafa   :  { %2316 = vmatprep.subr.bf16.mxu0 %v2573_v9  ;;  %v2609_v9 = vld [vmem:[#allocation13 + $0x20] ss:$16 sps:$4 sm:$0xff]  }
 0xafd   :  { %2317 = vmatpush3.bf16.msra.mxu0 %v2574_v10  ;;  %v2612_v10 = vld [vmem:[#allocation13 + $0x28] ss:$16 sps:$4 sm:$0xff]  }
 0xafe   :  { %2318 = vmatprep.subr.bf16.mxu0 %v2575_v11  ;;  %v152_v11 = vld [vmem:[%s3304_s11 + $0x13] ss:$0 sm:$0xff] }
 0xb01   :  { %2319 = vmatpush3.bf16.msra.mxu0 %v2576_v12 }
 0xb02   :  { %2320 = vmatprep.subr.bf16.mxu0 %v2577_v44 }
 0xb05   :  { %2321 = vmatpush3.bf16.msra.mxu0 %v2578_v13 }
 0xb06   :  { %2322 = vmatprep.subr.bf16.mxu0 %v2579_v15 }
 0xb09   :  { %2323 = vmatpush3.bf16.msra.mxu0 %v2580_v17 }
 0xb0a   :  { %2324 = vmatprep.subr.bf16.mxu0 %v2581_v45 }
 0xb0d   :  { %2325 = vmatpush3.bf16.msra.mxu0 %v2582_v18 }
 0xb0e   :  { %2448 = vmatprep.subr.bf16.mxu0 %v2882_v30 }
 0xbc3   :  { %v1429_v52 = vpop.f32.mrb[16].mxu0 }
 0xbc4   :  { %v1468_v31 = vpack.c.bf16 %v1429_v52, %v1429_v52  ;;  %v2426_v32 = vpop.f32.mrb[17].mxu0 }
 0xbc5   :  { %v1432_v33 = vpop.f32.mrb[18].mxu0 }
 0xbc6   :  { %1599 = vmatmul.mubr.bf16.vlgmr.msra.gmra.mrb[20].mxu0 %v1468_v31  ;;  %v2427_v34 = vpop.f32.mrb[19].mxu0 }
 0xbc7   :  { %2449 = vmatpush3.bf16.xpose.msra.mxu0 %v3232_v35  ;;  %2452 = vmatprep.mubr.msk.bf16.mxu0 %vm2883_vm7, %v2882_v30 }
 0xbc8   :  { %2450 = vmatprep.subr.bf16.mxu0 %v2882_v30 }
 0xbcf   :  { %2451 = vmatpush3.bf16.xpose.msra.mxu0 %v3239_v2 }
 0xbd0   :  { %1867 = vmatprep.subr.bf16.mxu0 %v2596_v43 }
 0xbd6   :  { %2453 = vmatmul.mubr.bf16.vlgmr.msra.gmra.mrb[24].mxu0 %v1721_v41 }
 0xbd7   :  { %1899 = vmatprep.mubr.bf16.mxu0 %v2880_v0  ;;  %1868 = vmatpush1.bf16.msra.mxu0 %v2594_v22 }
 0xbd8   :  { %1869 = vmatprep.subr.bf16.mxu0 %v2602_v48 }
 0xbdb   :  { %1870 = vmatpush1.bf16.msra.mxu0 %v2600_v47 }
 0xbdc   :  { %1991 = vmatprep.subr.bf16.mxu0 %v2608_v50 }
 0xc99   :  { %v2326_v57 = vpop.f32.mrb[20].mxu0 }
 0xc9a   :  { %v2327_v59 = vpop.f32.mrb[21].mxu0 }
 0xc9b   :  { %v2328_v30 = vadd.f32 %v2327_v59, %v2326_v57  ;;  %v2329_v53 = vpop.f32.mrb[22].mxu0 }
 0xc9c   :  { %v2330_v60 = vpop.f32.mrb[23].mxu0 }
 0xc9d   :  { %v1601_v61 = vadd.f32 %v2328_v30, %v151_v58 }
 0xc9f   :  { %v1606_v35 = vmax.f32 %v1601_v61, 0.0 }
 0xca1   :  { %v1623_v62 = vpack.c.bf16 %v1606_v35, %v1606_v35 }
 0xca3   :  { %2445 = vmatmul.mubr.bf16.vlgmr.msra.gmra.mrb[28].mxu1 %v1623_v62 }
 0xca4   :  { %1827 = vmatpush1.bf16.msra.mxu1 %v2591_v46  ;;  %1858 = vmatprep.mubr.bf16.mxu1 %v2880_v0 }
 0xca5   :  { %1828 = vmatprep.subr.bf16.mxu1 %v2599_v54 }
 0xca8   :  { %1829 = vmatpush1.bf16.msra.mxu1 %v2597_v38 }
 0xca9   :  { %v1757_v63 = vpop.f32.mrb[24].mxu0  ;;  %1950 = vmatprep.subr.bf16.mxu1 %v2605_v49 }
 0xcaa   :  { %v1771_v1 = vpack.c.bf16 %v1757_v63, %v1757_v63  ;;  %v2454_v55 = vpop.f32.mrb[25].mxu0 }
 0xcab   :  { %v1760_v2 = vpop.f32.mrb[26].mxu0 }
 0xcac   :  { %v1781_v4 = vshrl.u32 %v1771_v1, 16  ;;  %v2455_v5 = vpop.f32.mrb[27].mxu0 }
 0xcae   :  { %2229 = vmatmul.mubr.msk.bf16.vlgmr.msra.gmra.mrb[32].mxu1 %vm642_vm6, %v1781_v4  ;;  %2230 = vmatmul.mubr.msk.bf16.vlgmr.msra.gmra.mrb[28].mxu0 %vm642_vm6, %v1781_v4 }
 0xcaf   :  { %1951 = vmatpush1.bf16.msra.mxu1 %v2603_v3  ;;  %1992 = vmatpush1.bf16.msra.mxu0 %v2606_v51 }
 0xcb0   :  { %1952 = vmatprep.subr.bf16.mxu1 %v2611_v6  ;;  %1993 = vmatprep.subr.bf16.mxu0 %v2614_v8 }
 0xcb1   :  { %1982 = vmatprep.mubr.bf16.mxu1 %v2880_v0  ;;  %2023 = vmatprep.mubr.bf16.mxu0 %v2880_v0 }
 0xcb3   :  { %1953 = vmatpush1.bf16.msra.mxu1 %v2609_v9  ;;  %1994 = vmatpush1.bf16.msra.mxu0 %v2612_v10 }
 0xcb6   :  { %2239 = vmatmul.mubr.msk.bf16.vlgmr.msra.gmra.mrb[36].mxu1 %vm642_vm6, %v1771_v1  ;;  %2240 = vmatmul.mubr.msk.bf16.vlgmr.msra.gmra.mrb[32].mxu0 %vm642_vm6, %v1771_v1 }
 0xd76   :  { %v1706_v12 = vpop.f32.mrb[28].mxu1 }
 0xd77   :  { %v1707_v44 = vadd.f32 %v1706_v12, %v152_v11  ;;  %v2446_v13 = vpop.f32.mrb[29].mxu1 }
 0xd78   :  { %v1709_v15 = vpop.f32.mrb[30].mxu1 }
 0xd79   :  { %1712 = vst [vmem:[#allocation14] sm:$0x3] %v1707_v44  ;;  %v2447_v17 = vpop.f32.mrb[31].mxu1 }
 0xd7a   :  { %2844 = shalt.err (!%p2841_p4)
}
 0xd7b   :  { %s2845_s11 = scalar_lea.hbm %s3305_s12, 32 }
 0xd7c   :  { %p2846_p5 = scmp.ne.s32.totalorder %s3305_s12, %s2845_s11  ;;  %p2849_p6 = scmp.lt.u32.totalorder %s2845_s11, %s3305_s12 }
 0xd7e   :  { %p2851_p7 = pnand %p2849_p6, %p2846_p5 }
 0xd80   :  { %2854 = shalt.err (!%p2851_p7)
}
 0xd81   :  { %2104 = dma.vmem_to_hbm [thread:$0]  %s2102_s23, 32, %s3305_s12, [#allocation4]   ;;  %v1860_v0 = vpop.f32.mrb[32].mxu1  ;;  %v1901_v45 = vpop.f32.mrb[28].mxu0  ;;  %v2885_v54 = vmov 1966171168  }
 0xd82   :  { %v1862_v18 = vpop.f32.mrb[33].mxu1  ;;  %v1903_v20 = vpop.f32.mrb[29].mxu0  ;;  %v2068_v38 = vunpack.c.l.s4 %v2885_v54  ;;  %vm2092_vm8 = vcmp.lt.s32.totalorder %v160_v26, 512 }
 0xd83   :  { %v1864_v21 = vpop.f32.mrb[34].mxu1  ;;  %v1905_v23 = vpop.f32.mrb[30].mxu0 }
 0xd84   :  { %v1865_v24 = vpop.f32.mrb[35].mxu1  ;;  %v1906_v25 = vpop.f32.mrb[31].mxu0  ;;  %v2069_v49 = vunpack.c.0.s8 %v2068_v38 }
 0xd85   :  { %v2035_v27 = vpop.permute.xlu1 %2034 }
 0xd86   :  { %v2072_v55 = vsub.s32 %v2069_v49, %v3161_v7 }
 0xd89   :  { %v1984_v56 = vpop.f32.mrb[36].mxu1  ;;  %v2025_v28 = vpop.f32.mrb[32].mxu0 }
 0xd8a   :  { %v1985_v52 = vadd.f32 %v1984_v56, %v1860_v0  ;;  %v2026_v29 = vadd.f32 %v2025_v28, %v1901_v45  ;;  %v1986_v31 = vpop.f32.mrb[37].mxu1  ;;  %v2027_v32 = vpop.f32.mrb[33].mxu0 }
 0xd8b   :  { %v1987_v33 = vadd.f32 %v1986_v31, %v1862_v18  ;;  %v2028_v34 = vadd.f32 %v2027_v32, %v1903_v20  ;;  %v1988_v36 = vpop.f32.mrb[38].mxu1  ;;  %v2029_v37 = vpop.f32.mrb[34].mxu0 }
 0xd8c   :  { %v2037_v39 = vadd.f32 %v2035_v27, %v1985_v52  ;;  %v2039_v40 = vadd.f32 %v2035_v27, %v2026_v29  ;;  %v1989_v14 = vpop.f32.mrb[39].mxu1  ;;  %v2030_v41 = vpop.f32.mrb[35].mxu0 }
 0xd8d   :  { %v2038_v19 = vadd.f32 %v2035_v27, %v1987_v33  ;;  %v2040_v16 = vadd.f32 %v2035_v27, %v2028_v34 }
 0xd8e   :  { %v2041_v42 = vsub.f32 0.0, %v2037_v39  ;;  %v2043_v22 = vsub.f32 0.0, %v2039_v40 }
 0xd8f   :  { %v2042_v43 = vsub.f32 0.0, %v2038_v19  ;;  %v2044_v47 = vsub.f32 0.0, %v2040_v16 }
 0xd90   :  { %v2045_v48 = vmul.f32 1.442695, %v2041_v42  ;;  %v2049_v50 = vmul.f32 1.442695, %v2043_v22 }
 0xd91   :  { %v2047_v57 = vmul.f32 1.442695, %v2042_v43  ;;  %v2051_v58 = vmul.f32 1.442695, %v2044_v47 }
 0xd92   :  { %2663 = vpow2.f32 %v2045_v48 }
 0xd93   :  { %2665 = vpow2.f32 %v2049_v50 }
 0xd94   :  { %2667 = vpow2.f32 %v2047_v57 }
 0xd95   :  { %2669 = vpow2.f32 %v2051_v58 }
 0xd9c   :  { %v2664_v59 = vpop.eup %2663 }
 0xd9d   :  { %v2666_v30 = vpop.eup %2665  ;;  %v2053_v53 = vadd.f32 1.0, %v2664_v59 }
 0xd9e   :  { %v2668_v60 = vpop.eup %2667  ;;  %v2055_v61 = vadd.f32 1.0, %v2666_v30 }
 0xd9f   :  { %v2670_v35 = vpop.eup %2669  ;;  %2671 = vrcp.f32 %v2053_v53  ;;  %v2054_v46 = vadd.f32 1.0, %v2668_v60 }
 0xda0   :  { %2673 = vrcp.f32 %v2055_v61  ;;  %v2056_v62 = vadd.f32 1.0, %v2670_v35 }
 0xda1   :  { %2675 = vrcp.f32 %v2054_v46 }
 0xda2   :  { %2677 = vrcp.f32 %v2056_v62 }
 0xda9   :  { %v2672_v63 = vpop.eup %2671 }
 0xdaa   :  { %v2674_v1 = vpop.eup %2673 }
 0xdab   :  { %v2676_v2 = vpop.eup %2675 }
 0xdac   :  { %v2678_v3 = vpop.eup %2677  ;;  %v2065_v51 = vcombine.low %v2672_v63, %v2676_v2 }
 0xdad   :  { %v2066_v4 = vcombine.low %v2674_v1, %v2678_v3 }
 0xdae   :  { %v2073_v5 = vrot.slane %v2065_v51, %v2072_v55 }
 0xdaf   :  { %v2080_v6 = vrot.slane %v2066_v4, %v2072_v55 }
 0xdb1   :  { %v2081_v8 = vcombine.low %v2073_v5, %v2080_v6 }
 0xdb3   :  { %v2088_v9 = vrot.slane %v2081_v8, %v2072_v55 }
 0xdb5   :  { %2094 = vst.msk [vmem:[%s3306_s13] sm:$0xf] %vm2092_vm8, %v2088_v9 }
 0xdb6   :  { %2863 = dma.done.wait [#allocation4], 32  }
 0xdb7   :  { %2864 = vsyncadd [#allocation4], 4294967264 }
 0xdb8   :  { %2112 = vsyncpa [#allocation3], 1 }
 0xdb9   :  { %2113 = vsyncpa [#allocation6], 1 }
 0xdba   :  { %2114 = vsyncpa [#allocation9], 1 }
 0xdbb   :  { %2115 = vsyncpa [#allocation12], 1 }
 0xdbc   :  { %2116 = vsyncpa [#allocation4], 1 }

</bundles_post_ra>
